<compile_context>
chip_gen: v7x
topology: tpu7x:2x2x1
jax: 0.10.0
libtpu: 0.0.40
codegen_flags: <defaults>
</compile_context>

<pallas_src>
import functools

import jax
import jax.numpy as jnp
from jax.experimental import pallas as pl
from jax.experimental.pallas import tpu as pltpu

LANE = 128


def _round_up(x, m):
    return ((x + m - 1) // m) * m


# ---------------------------------------------------------------------------
# Pallas kernel: segmented first Linear + Linear/ReLU chain + LayerNorm +
# fused residual add.  Optionally also writes the pre-residual MLP output.
# ---------------------------------------------------------------------------
def _mlp_ln_res_kernel(*refs, num_segments, num_linear, ln_dim, eps, emit_pre):
    num_out = 2 if emit_pre else 1
    out_refs = refs[-num_out:]
    in_refs = refs[:-num_out]

    x_refs = in_refs[:num_segments]
    res_ref = in_refs[num_segments]
    w0_refs = in_refs[num_segments + 1: 2 * num_segments + 1]
    b0_ref = in_refs[2 * num_segments + 1]
    rest = in_refs[2 * num_segments + 2:]
    hid_refs = rest[:2 * (num_linear - 1)]
    gamma_ref = rest[-2]
    beta_ref = rest[-1]

    # Layer 0: concat([x0, x1, ...]) @ W0 computed as a sum of per-segment
    # partial matmuls — the concat never exists.  bf16 operands, f32 acc.
    h = None
    for s in range(num_segments):
        xs = x_refs[s][...].astype(jnp.bfloat16)
        p = jnp.dot(xs, w0_refs[s][...], preferred_element_type=jnp.float32)
        h = p if h is None else h + p
    h = h + b0_ref[...].astype(jnp.float32)
    h = jnp.maximum(h, 0.0)

    # Remaining Linear layers (ReLU on all but the final one).
    for li in range(num_linear - 1):
        w = hid_refs[2 * li]
        b = hid_refs[2 * li + 1][...].astype(jnp.float32)
        h = jnp.dot(h.astype(jnp.bfloat16), w[...],
                    preferred_element_type=jnp.float32) + b
        if li < num_linear - 2:
            h = jnp.maximum(h, 0.0)

    # LayerNorm over the real feature width `ln_dim`.  Padded lanes of h are
    # exactly zero (zero-padded weight columns / biases), so the lane sum over
    # the padded width divided by ln_dim is the true mean; the variance pass
    # masks padded lanes explicitly (two-pass, per review).
    inv_d = 1.0 / float(ln_dim)
    lane = jax.lax.broadcasted_iota(jnp.int32, (1, h.shape[-1]), 1)
    lane_mask = lane < ln_dim
    mean = jnp.sum(h, axis=-1, keepdims=True) * inv_d
    centered = jnp.where(lane_mask, h - mean, 0.0)
    var = jnp.sum(centered * centered, axis=-1, keepdims=True) * inv_d
    h = centered * jax.lax.rsqrt(var + eps)
    h = h * gamma_ref[...].astype(jnp.float32) + beta_ref[...].astype(jnp.float32)

    res = res_ref[...].astype(jnp.float32)
    if emit_pre:
        out_refs[0][...] = h.astype(out_refs[0].dtype)             # pre-residual
        out_refs[1][...] = (h + res).astype(out_refs[1].dtype)     # new state
    else:
        out_refs[0][...] = (h + res).astype(out_refs[0].dtype)


def fused_mlp_block(x_segments, residual, mlp_p, *, ln_dim, tile_rows=1024,
                    emit_pre=False, eps=1e-5):
    """x_segments: list of (N, h_pad) segment inputs (bf16 ok).
    residual: (N, h_pad) f32 carried state.  Returns new state (and optionally
    the pre-residual MLP output)."""
    n, h_pad = residual.shape
    num_segments = len(x_segments)
    w0_segs = mlp_p["w0_segs"]
    hidden_linears = mlp_p["linears"]
    num_linear = 1 + len(hidden_linears)

    # Row tile: big enough to amortize per-grid-step overhead, capped so the
    # grid has >= 2 steps, multiple of 16 for bf16 sublane packing.
    tile = min(tile_rows, _round_up(max(pl.cdiv(n, 2), 16), 16))
    if tile > n:
        # Tiny inputs: pad rows up to one tile (block must not exceed rows).
        pad = tile - n
        x_segments = [jnp.pad(x, ((0, pad), (0, 0))) for x in x_segments]
        residual = jnp.pad(residual, ((0, pad), (0, 0)))
        n_rows = tile
    else:
        n_rows = n  # partial trailing block handled by Pallas (no HBM pad copy)
    grid = (pl.cdiv(n_rows, tile),)

    row_spec = pl.BlockSpec((tile, h_pad), lambda i: (i, 0))

    def const2d(shape):
        return pl.BlockSpec(shape, lambda i: (0, 0))

    inputs, in_specs = [], []
    for x in x_segments:
        inputs.append(x)
        in_specs.append(row_spec)
    inputs.append(residual)
    in_specs.append(row_spec)
    for w in w0_segs:
        inputs.append(w)
        in_specs.append(const2d(w.shape))
    inputs.append(mlp_p["b0"].reshape(1, -1))
    in_specs.append(const2d((1, h_pad)))
    for (w, b) in hidden_linears:
        inputs.append(w)
        in_specs.append(const2d(w.shape))
        inputs.append(b.reshape(1, -1))
        in_specs.append(const2d((1, h_pad)))
    inputs.append(mlp_p["gamma"].reshape(1, -1))
    in_specs.append(const2d((1, h_pad)))
    inputs.append(mlp_p["beta"].reshape(1, -1))
    in_specs.append(const2d((1, h_pad)))

    out_dtype = residual.dtype
    if emit_pre:
        out_shape = (jax.ShapeDtypeStruct((n_rows, h_pad), out_dtype),
                     jax.ShapeDtypeStruct((n_rows, h_pad), out_dtype))
        out_specs = (row_spec, row_spec)
    else:
        out_shape = jax.ShapeDtypeStruct((n_rows, h_pad), out_dtype)
        out_specs = row_spec

    # Right-size the VMEM limit from actual block footprints (row blocks and
    # params are double-buffered by the pipeline), capped below v7x's 64 MiB.
    x_bytes = sum(tile * h_pad * jnp.dtype(x.dtype).itemsize for x in x_segments) * 2
    res_out_bytes = (1 + (2 if emit_pre else 1)) * tile * h_pad * 4 * 2
    w_itemsize = jnp.dtype(w0_segs[0].dtype).itemsize
    w_bytes = (num_segments + num_linear - 1) * h_pad * h_pad * w_itemsize * 2
    vec_bytes = (num_linear + 2) * h_pad * 4 * 2
    vmem_limit = int(min(max(x_bytes + res_out_bytes + w_bytes + vec_bytes
                             + (4 << 20), 16 << 20), 56 << 20))

    kernel = functools.partial(_mlp_ln_res_kernel, num_segments=num_segments,
                               num_linear=num_linear, ln_dim=ln_dim, eps=eps,
                               emit_pre=emit_pre)
    out = pl.pallas_call(
        kernel,
        out_shape=out_shape,
        grid=grid,
        in_specs=in_specs,
        out_specs=out_specs,
        compiler_params=pltpu.CompilerParams(
            dimension_semantics=("parallel",),
            vmem_limit_bytes=vmem_limit,
        ),
    )(*inputs)

    if emit_pre:
        pre, post = out
        return pre[:n], post[:n]
    return out[:n]


# ---------------------------------------------------------------------------
# GraphNetBlock / Process forward (features kept lane-padded, f32 state).
# ---------------------------------------------------------------------------
def _graphnet_block_forward(senders_s, receivers_s, node_f, edge_f, block, *,
                            hidden, num_nodes, tile_rows):
    node_bf16 = node_f.astype(jnp.bfloat16)

    # Edge update: MLP_edge over segments [h[senders], h[receivers], e];
    # residual fused; pre-residual output kept for the node accumulation.
    new_edge_pre, new_edge_f = fused_mlp_block(
        [node_bf16[senders_s], node_bf16[receivers_s],
         edge_f.astype(jnp.bfloat16)],
        edge_f, block["edge"], ln_dim=hidden, tile_rows=tile_rows,
        emit_pre=True)

    # Node update: receivers are pre-sorted -> fast sorted segment_sum instead
    # of a serializing scatter-add.  Uses the PRE-residual edge MLP output,
    # matching the PyTorch ordering.
    acc = jax.ops.segment_sum(new_edge_pre, receivers_s,
                              num_segments=num_nodes, indices_are_sorted=True)
    new_node_f = fused_mlp_block(
        [node_bf16, acc.astype(jnp.bfloat16)],
        node_f, block["node"], ln_dim=hidden, tile_rows=tile_rows,
        emit_pre=False)
    return new_node_f, new_edge_f


def process_forward(edge_idx, node_features, edge_features, padded_params, *,
                    hidden_dim, tile_rows=1024):
    senders, receivers = edge_idx
    num_nodes = node_features.shape[0]
    h_pad = padded_params[0]["node"]["gamma"].shape[0]
    node_f = jnp.pad(node_features.astype(jnp.float32),
                     ((0, 0), (0, h_pad - hidden_dim)))
    edge_f = jnp.pad(edge_features.astype(jnp.float32),
                     ((0, 0), (0, h_pad - hidden_dim)))

    # Sort edges by receiver once (sum is permutation-invariant); restore the
    # original edge order at the end.
    order = jnp.argsort(receivers)
    senders_s = senders[order]
    receivers_s = receivers[order]
    edge_f = edge_f[order]

    for block in padded_params:
        node_f, edge_f = _graphnet_block_forward(
            senders_s, receivers_s, node_f, edge_f, block,
            hidden=hidden_dim, num_nodes=num_nodes, tile_rows=tile_rows)

    edge_out = jnp.zeros_like(edge_f).at[order].set(edge_f)
    return node_f[:, :hidden_dim], edge_out[:, :hidden_dim]


# ---------------------------------------------------------------------------
# Parameter init (PyTorch-shaped), lane padding + W0 segment split, reference.
# ---------------------------------------------------------------------------
def _init_mlp(key, input_dim, hidden_dim, output_dim, num_layers):
    dims = [input_dim] + [hidden_dim] * num_layers + [output_dim]
    linears = []
    for i in range(len(dims) - 1):
        key, kw, kb = jax.random.split(key, 3)
        s = float(dims[i]) ** -0.5
        w = jax.random.uniform(kw, (dims[i], dims[i + 1]), jnp.float32, -s, s)
        b = jax.random.uniform(kb, (dims[i + 1],), jnp.float32, -s, s)
        linears.append((w, b))
    key, kg, kbeta = jax.random.split(key, 3)
    gamma = 1.0 + 0.1 * jax.random.uniform(kg, (output_dim,), jnp.float32, -1.0, 1.0)
    beta = 0.1 * jax.random.uniform(kbeta, (output_dim,), jnp.float32, -1.0, 1.0)
    return {"linears": linears, "gamma": gamma, "beta": beta}, key


def init_process_params(key, hidden_dim, num_layers, message_passing_steps):
    blocks = []
    for _ in range(message_passing_steps):
        node_mlp, key = _init_mlp(key, 2 * hidden_dim, hidden_dim, hidden_dim, num_layers)
        edge_mlp, key = _init_mlp(key, 3 * hidden_dim, hidden_dim, hidden_dim, num_layers)
        blocks.append({"node": node_mlp, "edge": edge_mlp})
    return blocks


def _pad_vec(v, n):
    return jnp.pad(v, (0, n - v.shape[0]))


def _pad_mat(w, r, c):
    return jnp.pad(w, ((0, r - w.shape[0]), (0, c - w.shape[1])))


def _pad_mlp_params(mlp, num_segments, hidden_dim, h_pad, weight_dtype):
    linears = mlp["linears"]
    w0, b0 = linears[0]
    # First weight's input axis is a concat of `num_segments` hidden-sized
    # blocks: split it into per-segment (h_pad, h_pad) sub-weights so the
    # kernel can sum partial matmuls instead of concatenating inputs.
    w0_segs = []
    for s in range(num_segments):
        seg = jnp.zeros((h_pad, h_pad), jnp.float32)
        seg = seg.at[:hidden_dim, :hidden_dim].set(
            w0[s * hidden_dim:(s + 1) * hidden_dim, :])
        w0_segs.append(seg.astype(weight_dtype))
    hidden = [(_pad_mat(w, h_pad, h_pad).astype(weight_dtype), _pad_vec(b, h_pad))
              for (w, b) in linears[1:]]
    return {"w0_segs": w0_segs, "b0": _pad_vec(b0, h_pad), "linears": hidden,
            "gamma": _pad_vec(mlp["gamma"], h_pad),
            "beta": _pad_vec(mlp["beta"], h_pad)}


def pad_process_params(params, hidden_dim, weight_dtype=jnp.bfloat16):
    h_pad = _round_up(hidden_dim, LANE)
    return [{"node": _pad_mlp_params(b["node"], 2, hidden_dim, h_pad, weight_dtype),
             "edge": _pad_mlp_params(b["edge"], 3, hidden_dim, h_pad, weight_dtype)}
            for b in params]


def _mlp_reference(x, mlp, eps=1e-5):
    h = x
    linears = mlp["linears"]
    for i, (w, b) in enumerate(linears):
        h = jnp.dot(h, w, precision=jax.lax.Precision.HIGHEST) + b
        if i < len(linears) - 1:
            h = jnp.maximum(h, 0.0)
    mean = jnp.mean(h, axis=-1, keepdims=True)
    var = jnp.mean(jnp.square(h - mean), axis=-1, keepdims=True)
    h = (h - mean) / jnp.sqrt(var + eps)
    return h * mlp["gamma"] + mlp["beta"]


def process_reference(edge_idx, node_features, edge_features, params):
    senders, receivers = edge_idx
    node_f, edge_f = node_features, edge_features
    for block in params:
        edge_in = jnp.concatenate([node_f[senders], node_f[receivers], edge_f], axis=-1)
        new_edge = _mlp_reference(edge_in, block["edge"])
        acc = jnp.zeros_like(node_f).at[receivers].add(new_edge)
        node_in = jnp.concatenate([node_f, acc], axis=-1)
        new_node = _mlp_reference(node_in, block["node"])
        node_f = new_node + node_f
        edge_f = new_edge + edge_f
    return node_f, edge_f


if __name__ == "__main__":
    hidden_dim = 32
    num_layers = 2
    message_passing_steps = 2
    num_nodes = 96
    num_edges = 256

    key = jax.random.PRNGKey(0)
    key, kn, ke, ks, kr = jax.random.split(key, 5)
    node_features = jax.random.normal(kn, (num_nodes, hidden_dim), jnp.float32)
    edge_features = jax.random.normal(ke, (num_edges, hidden_dim), jnp.float32)
    senders = jax.random.randint(ks, (num_edges,), 0, num_nodes, jnp.int32)
    receivers = jax.random.randint(kr, (num_edges,), 0, num_nodes, jnp.int32)
    edge_idx = (senders, receivers)

    params = init_process_params(key, hidden_dim, num_layers, message_passing_steps)
    padded_params = pad_process_params(params, hidden_dim)  # bf16 weights

    fwd = jax.jit(functools.partial(process_forward,
                                    hidden_dim=hidden_dim, tile_rows=1024))
    out_nodes, out_edges = fwd(edge_idx, node_features, edge_features, padded_params)
    out_nodes, out_edges = jax.block_until_ready((out_nodes, out_edges))

    ref_nodes, ref_edges = process_reference(edge_idx, node_features,
                                             edge_features, params)

    assert out_nodes.shape == (num_nodes, hidden_dim)
    assert out_edges.shape == (num_edges, hidden_dim)
    # bf16 matmul operands vs f32 reference -> loosened tolerance.
    err_n = float(jnp.max(jnp.abs(out_nodes - ref_nodes)))
    err_e = float(jnp.max(jnp.abs(out_edges - ref_edges)))
    assert jnp.allclose(out_nodes, ref_nodes, atol=5e-2, rtol=5e-2), err_n
    assert jnp.allclose(out_edges, ref_edges, atol=5e-2, rtol=5e-2), err_e

    print("KERNEL_OK")
</pallas_src>

<mosaic_0001>
module attributes {stable_mosaic.version = 11 : i64} {
  func.func @_mlp_ln_res_kernel(%arg0: i32, %arg1: memref<128x128xbf16, #tpu.memory_space<vmem>>, %arg2: memref<128x128xbf16, #tpu.memory_space<vmem>>, %arg3: memref<128x128xbf16, #tpu.memory_space<vmem>>, %arg4: memref<128x128xf32, #tpu.memory_space<vmem>>, %arg5: memref<128x128xbf16, #tpu.memory_space<vmem>>, %arg6: memref<128x128xbf16, #tpu.memory_space<vmem>>, %arg7: memref<128x128xbf16, #tpu.memory_space<vmem>>, %arg8: memref<1x128xf32, #tpu.memory_space<vmem>>, %arg9: memref<128x128xbf16, #tpu.memory_space<vmem>>, %arg10: memref<1x128xf32, #tpu.memory_space<vmem>>, %arg11: memref<128x128xbf16, #tpu.memory_space<vmem>>, %arg12: memref<1x128xf32, #tpu.memory_space<vmem>>, %arg13: memref<1x128xf32, #tpu.memory_space<vmem>>, %arg14: memref<1x128xf32, #tpu.memory_space<vmem>>, %arg15: memref<128x128xf32, #tpu.memory_space<vmem>>, %arg16: memref<128x128xf32, #tpu.memory_space<vmem>>) attributes {dimension_semantics = [#tpu.dimension_semantics<parallel>], iteration_bounds = array<i64: 2>, scalar_prefetch = 0 : i64, scratch_operands = 0 : i64, tpu.core_type = #tpu.core_type<tc>, window_params = [{transform_indices = @transform_0, window_bounds = array<i64: 128, 128>}, {transform_indices = @transform_1, window_bounds = array<i64: 128, 128>}, {transform_indices = @transform_2, window_bounds = array<i64: 128, 128>}, {transform_indices = @transform_3, window_bounds = array<i64: 128, 128>}, {pipeline_mode = #tpu.pipeline_mode<synchronous>, transform_indices = @transform_4, window_bounds = array<i64: 128, 128>}, {pipeline_mode = #tpu.pipeline_mode<synchronous>, transform_indices = @transform_5, window_bounds = array<i64: 128, 128>}, {pipeline_mode = #tpu.pipeline_mode<synchronous>, transform_indices = @transform_6, window_bounds = array<i64: 128, 128>}, {pipeline_mode = #tpu.pipeline_mode<synchronous>, transform_indices = @transform_7, window_bounds = array<i64: 1, 128>}, {pipeline_mode = #tpu.pipeline_mode<synchronous>, transform_indices = @transform_8, window_bounds = array<i64: 128, 128>}, {pipeline_mode = #tpu.pipeline_mode<synchronous>, transform_indices = @transform_9, window_bounds = array<i64: 1, 128>}, {pipeline_mode = #tpu.pipeline_mode<synchronous>, transform_indices = @transform_10, window_bounds = array<i64: 128, 128>}, {pipeline_mode = #tpu.pipeline_mode<synchronous>, transform_indices = @transform_11, window_bounds = array<i64: 1, 128>}, {pipeline_mode = #tpu.pipeline_mode<synchronous>, transform_indices = @transform_12, window_bounds = array<i64: 1, 128>}, {pipeline_mode = #tpu.pipeline_mode<synchronous>, transform_indices = @transform_13, window_bounds = array<i64: 1, 128>}, {transform_indices = @transform_14, window_bounds = array<i64: 128, 128>}, {transform_indices = @transform_15, window_bounds = array<i64: 128, 128>}]} {
    %c0 = arith.constant 0 : index
    %c0_0 = arith.constant 0 : index
    %0 = vector.load %arg1[%c0, %c0_0] : memref<128x128xbf16, #tpu.memory_space<vmem>>, vector<128x128xbf16>
    %c0_1 = arith.constant 0 : index
    %c0_2 = arith.constant 0 : index
    %1 = vector.load %arg5[%c0_1, %c0_2] : memref<128x128xbf16, #tpu.memory_space<vmem>>, vector<128x128xbf16>
    %cst = arith.constant dense<0.000000e+00> : vector<128x128xf32>
    %2 = tpu.matmul %0, %1, %cst {dimension_numbers = #tpu.dot_dimension_numbers<[1], [0], [0], [1], [0, 0, 1, 1], [], []>} : vector<128x128xbf16>, vector<128x128xbf16>, vector<128x128xf32> -> vector<128x128xf32>
    %c0_3 = arith.constant 0 : index
    %c0_4 = arith.constant 0 : index
    %3 = vector.load %arg2[%c0_3, %c0_4] : memref<128x128xbf16, #tpu.memory_space<vmem>>, vector<128x128xbf16>
    %c0_5 = arith.constant 0 : index
    %c0_6 = arith.constant 0 : index
    %4 = vector.load %arg6[%c0_5, %c0_6] : memref<128x128xbf16, #tpu.memory_space<vmem>>, vector<128x128xbf16>
    %cst_7 = arith.constant dense<0.000000e+00> : vector<128x128xf32>
    %5 = tpu.matmul %3, %4, %cst_7 {dimension_numbers = #tpu.dot_dimension_numbers<[1], [0], [0], [1], [0, 0, 1, 1], [], []>} : vector<128x128xbf16>, vector<128x128xbf16>, vector<128x128xf32> -> vector<128x128xf32>
    %6 = arith.addf %2, %5 : vector<128x128xf32>
    %c0_8 = arith.constant 0 : index
    %c0_9 = arith.constant 0 : index
    %7 = vector.load %arg3[%c0_8, %c0_9] : memref<128x128xbf16, #tpu.memory_space<vmem>>, vector<128x128xbf16>
    %c0_10 = arith.constant 0 : index
    %c0_11 = arith.constant 0 : index
    %8 = vector.load %arg7[%c0_10, %c0_11] : memref<128x128xbf16, #tpu.memory_space<vmem>>, vector<128x128xbf16>
    %cst_12 = arith.constant dense<0.000000e+00> : vector<128x128xf32>
    %9 = tpu.matmul %7, %8, %cst_12 {dimension_numbers = #tpu.dot_dimension_numbers<[1], [0], [0], [1], [0, 0, 1, 1], [], []>} : vector<128x128xbf16>, vector<128x128xbf16>, vector<128x128xf32> -> vector<128x128xf32>
    %10 = arith.addf %6, %9 : vector<128x128xf32>
    %c0_13 = arith.constant 0 : index
    %c0_14 = arith.constant 0 : index
    %11 = vector.load %arg8[%c0_13, %c0_14] : memref<1x128xf32, #tpu.memory_space<vmem>>, vector<1x128xf32>
    %12 = vector.broadcast %11 : vector<1x128xf32> to vector<128x128xf32>
    %13 = arith.addf %10, %12 : vector<128x128xf32>
    %cst_15 = arith.constant 0.000000e+00 : f32
    %14 = vector.broadcast %cst_15 : f32 to vector<128x128xf32>
    %15 = arith.maximumf %13, %14 : vector<128x128xf32>
    %c0_16 = arith.constant 0 : index
    %c0_17 = arith.constant 0 : index
    %16 = vector.load %arg10[%c0_16, %c0_17] : memref<1x128xf32, #tpu.memory_space<vmem>>, vector<1x128xf32>
    %17 = arith.truncf %15 : vector<128x128xf32> to vector<128x128xbf16>
    %c0_18 = arith.constant 0 : index
    %c0_19 = arith.constant 0 : index
    %18 = vector.load %arg9[%c0_18, %c0_19] : memref<128x128xbf16, #tpu.memory_space<vmem>>, vector<128x128xbf16>
    %cst_20 = arith.constant dense<0.000000e+00> : vector<128x128xf32>
    %19 = tpu.matmul %17, %18, %cst_20 {dimension_numbers = #tpu.dot_dimension_numbers<[1], [0], [0], [1], [0, 0, 1, 1], [], []>} : vector<128x128xbf16>, vector<128x128xbf16>, vector<128x128xf32> -> vector<128x128xf32>
    %20 = vector.broadcast %16 : vector<1x128xf32> to vector<128x128xf32>
    %21 = arith.addf %19, %20 : vector<128x128xf32>
    %cst_21 = arith.constant 0.000000e+00 : f32
    %22 = vector.broadcast %cst_21 : f32 to vector<128x128xf32>
    %23 = arith.maximumf %21, %22 : vector<128x128xf32>
    %c0_22 = arith.constant 0 : index
    %c0_23 = arith.constant 0 : index
    %24 = vector.load %arg12[%c0_22, %c0_23] : memref<1x128xf32, #tpu.memory_space<vmem>>, vector<1x128xf32>
    %25 = arith.truncf %23 : vector<128x128xf32> to vector<128x128xbf16>
    %c0_24 = arith.constant 0 : index
    %c0_25 = arith.constant 0 : index
    %26 = vector.load %arg11[%c0_24, %c0_25] : memref<128x128xbf16, #tpu.memory_space<vmem>>, vector<128x128xbf16>
    %cst_26 = arith.constant dense<0.000000e+00> : vector<128x128xf32>
    %27 = tpu.matmul %25, %26, %cst_26 {dimension_numbers = #tpu.dot_dimension_numbers<[1], [0], [0], [1], [0, 0, 1, 1], [], []>} : vector<128x128xbf16>, vector<128x128xbf16>, vector<128x128xf32> -> vector<128x128xf32>
    %28 = vector.broadcast %24 : vector<1x128xf32> to vector<128x128xf32>
    %29 = arith.addf %27, %28 : vector<128x128xf32>
    %30 = tpu.iota {dimensions = array<i32: 1>} : vector<1x128xi32>
    %c32_i32 = arith.constant 32 : i32
    %31 = vector.broadcast %c32_i32 : i32 to vector<1x128xi32>
    %32 = arith.cmpi slt, %30, %31 : vector<1x128xi32>
    %cst_27 = arith.constant dense<0.000000e+00> : vector<128xf32>
    %33 = vector.multi_reduction <add>, %29, %cst_27 [1] : vector<128x128xf32> to vector<128xf32>
    %34 = vector.shape_cast %33 : vector<128xf32> to vector<128x1xf32>
    %cst_28 = arith.constant 3.125000e-02 : f32
    %35 = vector.broadcast %cst_28 : f32 to vector<128x1xf32>
    %36 = arith.mulf %34, %35 : vector<128x1xf32>
    %37 = vector.broadcast %36 : vector<128x1xf32> to vector<128x128xf32>
    %38 = arith.subf %29, %37 : vector<128x128xf32>
    %cst_29 = arith.constant 0.000000e+00 : f32
    %39 = vector.shape_cast %32 : vector<1x128xi1> to vector<1x128xi1>
    %40 = vector.broadcast %39 : vector<1x128xi1> to vector<128x128xi1>
    %41 = vector.broadcast %cst_29 : f32 to vector<128x128xf32>
    %42 = arith.select %40, %38, %41 : vector<128x128xi1>, vector<128x128xf32>
    %43 = arith.mulf %42, %42 : vector<128x128xf32>
    %cst_30 = arith.constant dense<0.000000e+00> : vector<128xf32>
    %44 = vector.multi_reduction <add>, %43, %cst_30 [1] : vector<128x128xf32> to vector<128xf32>
    %45 = vector.shape_cast %44 : vector<128xf32> to vector<128x1xf32>
    %cst_31 = arith.constant 3.125000e-02 : f32
    %46 = vector.broadcast %cst_31 : f32 to vector<128x1xf32>
    %47 = arith.mulf %45, %46 : vector<128x1xf32>
    %cst_32 = arith.constant 9.99999974E-6 : f32
    %48 = vector.broadcast %cst_32 : f32 to vector<128x1xf32>
    %49 = arith.addf %47, %48 : vector<128x1xf32>
    %50 = math.rsqrt %49 : vector<128x1xf32>
    %51 = vector.broadcast %50 : vector<128x1xf32> to vector<128x128xf32>
    %52 = arith.mulf %42, %51 : vector<128x128xf32>
    %c0_33 = arith.constant 0 : index
    %c0_34 = arith.constant 0 : index
    %53 = vector.load %arg13[%c0_33, %c0_34] : memref<1x128xf32, #tpu.memory_space<vmem>>, vector<1x128xf32>
    %54 = vector.broadcast %53 : vector<1x128xf32> to vector<128x128xf32>
    %55 = arith.mulf %52, %54 : vector<128x128xf32>
    %c0_35 = arith.constant 0 : index
    %c0_36 = arith.constant 0 : index
    %56 = vector.load %arg14[%c0_35, %c0_36] : memref<1x128xf32, #tpu.memory_space<vmem>>, vector<1x128xf32>
    %57 = vector.broadcast %56 : vector<1x128xf32> to vector<128x128xf32>
    %58 = arith.addf %55, %57 : vector<128x128xf32>
    %c0_37 = arith.constant 0 : index
    %c0_38 = arith.constant 0 : index
    %59 = vector.load %arg4[%c0_37, %c0_38] : memref<128x128xf32, #tpu.memory_space<vmem>>, vector<128x128xf32>
    %c0_39 = arith.constant 0 : index
    %c0_40 = arith.constant 0 : index
    %60 = vector.load %arg15[%c0_39, %c0_40] : memref<128x128xf32, #tpu.memory_space<vmem>>, vector<128x128xf32>
    tpu.vector_store %arg15[%c0_39, %c0_40], %58 {strides = array<i32>} : memref<128x128xf32, #tpu.memory_space<vmem>>, vector<128x128xf32>,
    %61 = arith.addf %58, %59 : vector<128x128xf32>
    %c0_41 = arith.constant 0 : index
    %c0_42 = arith.constant 0 : index
    %62 = vector.load %arg16[%c0_41, %c0_42] : memref<128x128xf32, #tpu.memory_space<vmem>>, vector<128x128xf32>
    tpu.vector_store %arg16[%c0_41, %c0_42], %61 {strides = array<i32>} : memref<128x128xf32, #tpu.memory_space<vmem>>, vector<128x128xf32>,
    return
  }
  func.func @transform_0(%arg0: i32) -> (i32, i32) {
    %c0_i32 = arith.constant 0 : i32
    %c0_i32_0 = arith.constant 0 : i32
    return %arg0, %c0_i32 : i32, i32
  }
  func.func @transform_1(%arg0: i32) -> (i32, i32) {
    %c0_i32 = arith.constant 0 : i32
    %c0_i32_0 = arith.constant 0 : i32
    return %arg0, %c0_i32 : i32, i32
  }
  func.func @transform_2(%arg0: i32) -> (i32, i32) {
    %c0_i32 = arith.constant 0 : i32
    %c0_i32_0 = arith.constant 0 : i32
    return %arg0, %c0_i32 : i32, i32
  }
  func.func @transform_3(%arg0: i32) -> (i32, i32) {
    %c0_i32 = arith.constant 0 : i32
    %c0_i32_0 = arith.constant 0 : i32
    return %arg0, %c0_i32 : i32, i32
  }
  func.func @transform_4(%arg0: i32) -> (i32, i32) {
    %c0_i32 = arith.constant 0 : i32
    %c0_i32_0 = arith.constant 0 : i32
    %c0_i32_1 = arith.constant 0 : i32
    return %c0_i32, %c0_i32_0 : i32, i32
  }
  func.func @transform_5(%arg0: i32) -> (i32, i32) {
    %c0_i32 = arith.constant 0 : i32
    %c0_i32_0 = arith.constant 0 : i32
    %c0_i32_1 = arith.constant 0 : i32
    return %c0_i32, %c0_i32_0 : i32, i32
  }
  func.func @transform_6(%arg0: i32) -> (i32, i32) {
    %c0_i32 = arith.constant 0 : i32
    %c0_i32_0 = arith.constant 0 : i32
    %c0_i32_1 = arith.constant 0 : i32
    return %c0_i32, %c0_i32_0 : i32, i32
  }
  func.func @transform_7(%arg0: i32) -> (i32, i32) {
    %c0_i32 = arith.constant 0 : i32
    %c0_i32_0 = arith.constant 0 : i32
    %c0_i32_1 = arith.constant 0 : i32
    return %c0_i32, %c0_i32_0 : i32, i32
  }
  func.func @transform_8(%arg0: i32) -> (i32, i32) {
    %c0_i32 = arith.constant 0 : i32
    %c0_i32_0 = arith.constant 0 : i32
    %c0_i32_1 = arith.constant 0 : i32
    return %c0_i32, %c0_i32_0 : i32, i32
  }
  func.func @transform_9(%arg0: i32) -> (i32, i32) {
    %c0_i32 = arith.constant 0 : i32
    %c0_i32_0 = arith.constant 0 : i32
    %c0_i32_1 = arith.constant 0 : i32
    return %c0_i32, %c0_i32_0 : i32, i32
  }
  func.func @transform_10(%arg0: i32) -> (i32, i32) {
    %c0_i32 = arith.constant 0 : i32
    %c0_i32_0 = arith.constant 0 : i32
    %c0_i32_1 = arith.constant 0 : i32
    return %c0_i32, %c0_i32_0 : i32, i32
  }
  func.func @transform_11(%arg0: i32) -> (i32, i32) {
    %c0_i32 = arith.constant 0 : i32
    %c0_i32_0 = arith.constant 0 : i32
    %c0_i32_1 = arith.constant 0 : i32
    return %c0_i32, %c0_i32_0 : i32, i32
  }
  func.func @transform_12(%arg0: i32) -> (i32, i32) {
    %c0_i32 = arith.constant 0 : i32
    %c0_i32_0 = arith.constant 0 : i32
    %c0_i32_1 = arith.constant 0 : i32
    return %c0_i32, %c0_i32_0 : i32, i32
  }
  func.func @transform_13(%arg0: i32) -> (i32, i32) {
    %c0_i32 = arith.constant 0 : i32
    %c0_i32_0 = arith.constant 0 : i32
    %c0_i32_1 = arith.constant 0 : i32
    return %c0_i32, %c0_i32_0 : i32, i32
  }
  func.func @transform_14(%arg0: i32) -> (i32, i32) {
    %c0_i32 = arith.constant 0 : i32
    %c0_i32_0 = arith.constant 0 : i32
    return %arg0, %c0_i32 : i32, i32
  }
  func.func @transform_15(%arg0: i32) -> (i32, i32) {
    %c0_i32 = arith.constant 0 : i32
    %c0_i32_0 = arith.constant 0 : i32
    return %arg0, %c0_i32 : i32, i32
  }
}

module attributes {stable_mosaic.version = 11 : i64} {
  func.func @_mlp_ln_res_kernel(%arg0: i32, %arg1: memref<48x128xbf16, #tpu.memory_space<vmem>>, %arg2: memref<48x128xbf16, #tpu.memory_space<vmem>>, %arg3: memref<48x128xf32, #tpu.memory_space<vmem>>, %arg4: memref<128x128xbf16, #tpu.memory_space<vmem>>, %arg5: memref<128x128xbf16, #tpu.memory_space<vmem>>, %arg6: memref<1x128xf32, #tpu.memory_space<vmem>>, %arg7: memref<128x128xbf16, #tpu.memory_space<vmem>>, %arg8: memref<1x128xf32, #tpu.memory_space<vmem>>, %arg9: memref<128x128xbf16, #tpu.memory_space<vmem>>, %arg10: memref<1x128xf32, #tpu.memory_space<vmem>>, %arg11: memref<1x128xf32, #tpu.memory_space<vmem>>, %arg12: memref<1x128xf32, #tpu.memory_space<vmem>>, %arg13: memref<48x128xf32, #tpu.memory_space<vmem>>) attributes {dimension_semantics = [#tpu.dimension_semantics<parallel>], iteration_bounds = array<i64: 2>, scalar_prefetch = 0 : i64, scratch_operands = 0 : i64, tpu.core_type = #tpu.core_type<tc>, window_params = [{transform_indices = @transform_0, window_bounds = array<i64: 48, 128>}, {transform_indices = @transform_1, window_bounds = array<i64: 48, 128>}, {transform_indices = @transform_2, window_bounds = array<i64: 48, 128>}, {pipeline_mode = #tpu.pipeline_mode<synchronous>, transform_indices = @transform_3, window_bounds = array<i64: 128, 128>}, {pipeline_mode = #tpu.pipeline_mode<synchronous>, transform_indices = @transform_4, window_bounds = array<i64: 128, 128>}, {pipeline_mode = #tpu.pipeline_mode<synchronous>, transform_indices = @transform_5, window_bounds = array<i64: 1, 128>}, {pipeline_mode = #tpu.pipeline_mode<synchronous>, transform_indices = @transform_6, window_bounds = array<i64: 128, 128>}, {pipeline_mode = #tpu.pipeline_mode<synchronous>, transform_indices = @transform_7, window_bounds = array<i64: 1, 128>}, {pipeline_mode = #tpu.pipeline_mode<synchronous>, transform_indices = @transform_8, window_bounds = array<i64: 128, 128>}, {pipeline_mode = #tpu.pipeline_mode<synchronous>, transform_indices = @transform_9, window_bounds = array<i64: 1, 128>}, {pipeline_mode = #tpu.pipeline_mode<synchronous>, transform_indices = @transform_10, window_bounds = array<i64: 1, 128>}, {pipeline_mode = #tpu.pipeline_mode<synchronous>, transform_indices = @transform_11, window_bounds = array<i64: 1, 128>}, {transform_indices = @transform_12, window_bounds = array<i64: 48, 128>}]} {
    %c0 = arith.constant 0 : index
    %c0_0 = arith.constant 0 : index
    %0 = vector.load %arg1[%c0, %c0_0] : memref<48x128xbf16, #tpu.memory_space<vmem>>, vector<48x128xbf16>
    %c0_1 = arith.constant 0 : index
    %c0_2 = arith.constant 0 : index
    %1 = vector.load %arg4[%c0_1, %c0_2] : memref<128x128xbf16, #tpu.memory_space<vmem>>, vector<128x128xbf16>
    %cst = arith.constant dense<0.000000e+00> : vector<48x128xf32>
    %2 = tpu.matmul %0, %1, %cst {dimension_numbers = #tpu.dot_dimension_numbers<[1], [0], [0], [1], [0, 0, 1, 1], [], []>} : vector<48x128xbf16>, vector<128x128xbf16>, vector<48x128xf32> -> vector<48x128xf32>
    %c0_3 = arith.constant 0 : index
    %c0_4 = arith.constant 0 : index
    %3 = vector.load %arg2[%c0_3, %c0_4] : memref<48x128xbf16, #tpu.memory_space<vmem>>, vector<48x128xbf16>
    %c0_5 = arith.constant 0 : index
    %c0_6 = arith.constant 0 : index
    %4 = vector.load %arg5[%c0_5, %c0_6] : memref<128x128xbf16, #tpu.memory_space<vmem>>, vector<128x128xbf16>
    %cst_7 = arith.constant dense<0.000000e+00> : vector<48x128xf32>
    %5 = tpu.matmul %3, %4, %cst_7 {dimension_numbers = #tpu.dot_dimension_numbers<[1], [0], [0], [1], [0, 0, 1, 1], [], []>} : vector<48x128xbf16>, vector<128x128xbf16>, vector<48x128xf32> -> vector<48x128xf32>
    %6 = arith.addf %2, %5 : vector<48x128xf32>
    %c0_8 = arith.constant 0 : index
    %c0_9 = arith.constant 0 : index
    %7 = vector.load %arg6[%c0_8, %c0_9] : memref<1x128xf32, #tpu.memory_space<vmem>>, vector<1x128xf32>
    %8 = vector.broadcast %7 : vector<1x128xf32> to vector<48x128xf32>
    %9 = arith.addf %6, %8 : vector<48x128xf32>
    %cst_10 = arith.constant 0.000000e+00 : f32
    %10 = vector.broadcast %cst_10 : f32 to vector<48x128xf32>
    %11 = arith.maximumf %9, %10 : vector<48x128xf32>
    %c0_11 = arith.constant 0 : index
    %c0_12 = arith.constant 0 : index
    %12 = vector.load %arg8[%c0_11, %c0_12] : memref<1x128xf32, #tpu.memory_space<vmem>>, vector<1x128xf32>
    %13 = arith.truncf %11 : vector<48x128xf32> to vector<48x128xbf16>
    %c0_13 = arith.constant 0 : index
    %c0_14 = arith.constant 0 : index
    %14 = vector.load %arg7[%c0_13, %c0_14] : memref<128x128xbf16, #tpu.memory_space<vmem>>, vector<128x128xbf16>
    %cst_15 = arith.constant dense<0.000000e+00> : vector<48x128xf32>
    %15 = tpu.matmul %13, %14, %cst_15 {dimension_numbers = #tpu.dot_dimension_numbers<[1], [0], [0], [1], [0, 0, 1, 1], [], []>} : vector<48x128xbf16>, vector<128x128xbf16>, vector<48x128xf32> -> vector<48x128xf32>
    %16 = vector.broadcast %12 : vector<1x128xf32> to vector<48x128xf32>
    %17 = arith.addf %15, %16 : vector<48x128xf32>
    %cst_16 = arith.constant 0.000000e+00 : f32
    %18 = vector.broadcast %cst_16 : f32 to vector<48x128xf32>
    %19 = arith.maximumf %17, %18 : vector<48x128xf32>
    %c0_17 = arith.constant 0 : index
    %c0_18 = arith.constant 0 : index
    %20 = vector.load %arg10[%c0_17, %c0_18] : memref<1x128xf32, #tpu.memory_space<vmem>>, vector<1x128xf32>
    %21 = arith.truncf %19 : vector<48x128xf32> to vector<48x128xbf16>
    %c0_19 = arith.constant 0 : index
    %c0_20 = arith.constant 0 : index
    %22 = vector.load %arg9[%c0_19, %c0_20] : memref<128x128xbf16, #tpu.memory_space<vmem>>, vector<128x128xbf16>
    %cst_21 = arith.constant dense<0.000000e+00> : vector<48x128xf32>
    %23 = tpu.matmul %21, %22, %cst_21 {dimension_numbers = #tpu.dot_dimension_numbers<[1], [0], [0], [1], [0, 0, 1, 1], [], []>} : vector<48x128xbf16>, vector<128x128xbf16>, vector<48x128xf32> -> vector<48x128xf32>
    %24 = vector.broadcast %20 : vector<1x128xf32> to vector<48x128xf32>
    %25 = arith.addf %23, %24 : vector<48x128xf32>
    %26 = tpu.iota {dimensions = array<i32: 1>} : vector<1x128xi32>
    %c32_i32 = arith.constant 32 : i32
    %27 = vector.broadcast %c32_i32 : i32 to vector<1x128xi32>
    %28 = arith.cmpi slt, %26, %27 : vector<1x128xi32>
    %cst_22 = arith.constant dense<0.000000e+00> : vector<48xf32>
    %29 = vector.multi_reduction <add>, %25, %cst_22 [1] : vector<48x128xf32> to vector<48xf32>
    %30 = vector.shape_cast %29 : vector<48xf32> to vector<48x1xf32>
    %cst_23 = arith.constant 3.125000e-02 : f32
    %31 = vector.broadcast %cst_23 : f32 to vector<48x1xf32>
    %32 = arith.mulf %30, %31 : vector<48x1xf32>
    %33 = vector.broadcast %32 : vector<48x1xf32> to vector<48x128xf32>
    %34 = arith.subf %25, %33 : vector<48x128xf32>
    %cst_24 = arith.constant 0.000000e+00 : f32
    %35 = vector.shape_cast %28 : vector<1x128xi1> to vector<1x128xi1>
    %36 = vector.broadcast %35 : vector<1x128xi1> to vector<48x128xi1>
    %37 = vector.broadcast %cst_24 : f32 to vector<48x128xf32>
    %38 = arith.select %36, %34, %37 : vector<48x128xi1>, vector<48x128xf32>
    %39 = arith.mulf %38, %38 : vector<48x128xf32>
    %cst_25 = arith.constant dense<0.000000e+00> : vector<48xf32>
    %40 = vector.multi_reduction <add>, %39, %cst_25 [1] : vector<48x128xf32> to vector<48xf32>
    %41 = vector.shape_cast %40 : vector<48xf32> to vector<48x1xf32>
    %cst_26 = arith.constant 3.125000e-02 : f32
    %42 = vector.broadcast %cst_26 : f32 to vector<48x1xf32>
    %43 = arith.mulf %41, %42 : vector<48x1xf32>
    %cst_27 = arith.constant 9.99999974E-6 : f32
    %44 = vector.broadcast %cst_27 : f32 to vector<48x1xf32>
    %45 = arith.addf %43, %44 : vector<48x1xf32>
    %46 = math.rsqrt %45 : vector<48x1xf32>
    %47 = vector.broadcast %46 : vector<48x1xf32> to vector<48x128xf32>
    %48 = arith.mulf %38, %47 : vector<48x128xf32>
    %c0_28 = arith.constant 0 : index
    %c0_29 = arith.constant 0 : index
    %49 = vector.load %arg11[%c0_28, %c0_29] : memref<1x128xf32, #tpu.memory_space<vmem>>, vector<1x128xf32>
    %50 = vector.broadcast %49 : vector<1x128xf32> to vector<48x128xf32>
    %51 = arith.mulf %48, %50 : vector<48x128xf32>
    %c0_30 = arith.constant 0 : index
    %c0_31 = arith.constant 0 : index
    %52 = vector.load %arg12[%c0_30, %c0_31] : memref<1x128xf32, #tpu.memory_space<vmem>>, vector<1x128xf32>
    %53 = vector.broadcast %52 : vector<1x128xf32> to vector<48x128xf32>
    %54 = arith.addf %51, %53 : vector<48x128xf32>
    %c0_32 = arith.constant 0 : index
    %c0_33 = arith.constant 0 : index
    %55 = vector.load %arg3[%c0_32, %c0_33] : memref<48x128xf32, #tpu.memory_space<vmem>>, vector<48x128xf32>
    %56 = arith.addf %54, %55 : vector<48x128xf32>
    %c0_34 = arith.constant 0 : index
    %c0_35 = arith.constant 0 : index
    %57 = vector.load %arg13[%c0_34, %c0_35] : memref<48x128xf32, #tpu.memory_space<vmem>>, vector<48x128xf32>
    tpu.vector_store %arg13[%c0_34, %c0_35], %56 {strides = array<i32>} : memref<48x128xf32, #tpu.memory_space<vmem>>, vector<48x128xf32>,
    return
  }
  func.func @transform_0(%arg0: i32) -> (i32, i32) {
    %c0_i32 = arith.constant 0 : i32
    %c0_i32_0 = arith.constant 0 : i32
    return %arg0, %c0_i32 : i32, i32
  }
  func.func @transform_1(%arg0: i32) -> (i32, i32) {
    %c0_i32 = arith.constant 0 : i32
    %c0_i32_0 = arith.constant 0 : i32
    return %arg0, %c0_i32 : i32, i32
  }
  func.func @transform_2(%arg0: i32) -> (i32, i32) {
    %c0_i32 = arith.constant 0 : i32
    %c0_i32_0 = arith.constant 0 : i32
    return %arg0, %c0_i32 : i32, i32
  }
  func.func @transform_3(%arg0: i32) -> (i32, i32) {
    %c0_i32 = arith.constant 0 : i32
    %c0_i32_0 = arith.constant 0 : i32
    %c0_i32_1 = arith.constant 0 : i32
    return %c0_i32, %c0_i32_0 : i32, i32
  }
  func.func @transform_4(%arg0: i32) -> (i32, i32) {
    %c0_i32 = arith.constant 0 : i32
    %c0_i32_0 = arith.constant 0 : i32
    %c0_i32_1 = arith.constant 0 : i32
    return %c0_i32, %c0_i32_0 : i32, i32
  }
  func.func @transform_5(%arg0: i32) -> (i32, i32) {
    %c0_i32 = arith.constant 0 : i32
    %c0_i32_0 = arith.constant 0 : i32
    %c0_i32_1 = arith.constant 0 : i32
    return %c0_i32, %c0_i32_0 : i32, i32
  }
  func.func @transform_6(%arg0: i32) -> (i32, i32) {
    %c0_i32 = arith.constant 0 : i32
    %c0_i32_0 = arith.constant 0 : i32
    %c0_i32_1 = arith.constant 0 : i32
    return %c0_i32, %c0_i32_0 : i32, i32
  }
  func.func @transform_7(%arg0: i32) -> (i32, i32) {
    %c0_i32 = arith.constant 0 : i32
    %c0_i32_0 = arith.constant 0 : i32
    %c0_i32_1 = arith.constant 0 : i32
    return %c0_i32, %c0_i32_0 : i32, i32
  }
  func.func @transform_8(%arg0: i32) -> (i32, i32) {
    %c0_i32 = arith.constant 0 : i32
    %c0_i32_0 = arith.constant 0 : i32
    %c0_i32_1 = arith.constant 0 : i32
    return %c0_i32, %c0_i32_0 : i32, i32
  }
  func.func @transform_9(%arg0: i32) -> (i32, i32) {
    %c0_i32 = arith.constant 0 : i32
    %c0_i32_0 = arith.constant 0 : i32
    %c0_i32_1 = arith.constant 0 : i32
    return %c0_i32, %c0_i32_0 : i32, i32
  }
  func.func @transform_10(%arg0: i32) -> (i32, i32) {
    %c0_i32 = arith.constant 0 : i32
    %c0_i32_0 = arith.constant 0 : i32
    %c0_i32_1 = arith.constant 0 : i32
    return %c0_i32, %c0_i32_0 : i32, i32
  }
  func.func @transform_11(%arg0: i32) -> (i32, i32) {
    %c0_i32 = arith.constant 0 : i32
    %c0_i32_0 = arith.constant 0 : i32
    %c0_i32_1 = arith.constant 0 : i32
    return %c0_i32, %c0_i32_0 : i32, i32
  }
  func.func @transform_12(%arg0: i32) -> (i32, i32) {
    %c0_i32 = arith.constant 0 : i32
    %c0_i32_0 = arith.constant 0 : i32
    return %arg0, %c0_i32 : i32, i32
  }
}

</mosaic_0001>

<bundles_post_ra>
// kernel: process_forward.4
= control target key start
LH: loop header
LB: loop body
LE: loop exit
PB: predicated region body
PF: predicated region fallthrough
CT: control target
= control target key end

     0   :  { %s2662_s18 = smov 0   ;;  %s3145_s0 = inlined_call_operand.vmem [shape: bf16[256,128], index: 0, kind: input, shape index: {}]   ;;  %s3146_s1 = inlined_call_operand.vmem [shape: bf16[256,128], index: 1, kind: input, shape index: {}]   ;;  %s3147_s2 = inlined_call_operand.vmem [shape: bf16[256,128], index: 2, kind: input, shape index: {}]   ;;  %s3148_s3 = inlined_call_operand.vmem [shape: f32[256,128], index: 3, kind: input, shape index: {}]   ;;  %s3149_s4 = inlined_call_operand.vmem [shape: bf16[128,128], index: 4, kind: input, shape index: {}]   ;;  %s3150_s5 = inlined_call_operand.vmem [shape: bf16[128,128], index: 5, kind: input, shape index: {}]   ;;  %s3151_s6 = inlined_call_operand.vmem [shape: bf16[128,128], index: 6, kind: input, shape index: {}]   ;;  %s3152_s7 = inlined_call_operand.vmem [shape: f32[1,128], index: 7, kind: input, shape index: {}]   ;;  %s3153_s8 = inlined_call_operand.vmem [shape: bf16[128,128], index: 8, kind: input, shape index: {}]   ;;  %s3154_s9 = inlined_call_operand.vmem [shape: f32[1,128], index: 9, kind: input, shape index: {}]   ;;  %s3155_s10 = inlined_call_operand.vmem [shape: bf16[128,128], index: 10, kind: input, shape index: {}]   ;;  %s3156_s11 = inlined_call_operand.vmem [shape: f32[1,128], index: 11, kind: input, shape index: {}]   ;;  %s3157_s12 = inlined_call_operand.vmem [shape: f32[1,128], index: 12, kind: input, shape index: {}]   ;;  %s3158_s13 = inlined_call_operand.vmem [shape: f32[1,128], index: 13, kind: input, shape index: {}]   ;;  %s3159_s14 = inlined_call_operand.vmem [shape: f32[256,128], index: 14, kind: output, shape index: {0}]   ;;  %s3160_s15 = inlined_call_operand.vmem [shape: f32[256,128], index: 15, kind: output, shape index: {1}]  }
   0x1 LB: > { %s2110_s19 = sadd.s32 4294967295, %s2580_s18   ;;  %p2114_p0 = scmp.ge.s32.totalorder %s2580_s18, 1  ;;  %s2580_s18 = sphi %s2662_s18, %s26_s18  }
   0x2   : > { %p474_p1 = scmp.lt.s32.totalorder %s2580_s18, 3 }
   0x4   : > { %p475_p2 = pnand %p2114_p0, %p474_p1 }
   0x5   : > { %v2478_v0 = vld [vmem:[%s3150_s5] sm:$0xff] (!%p475_p2)   ;;  %s2115_s22 = sshll.u32 (!%p475_p2), %s2110_s19, 4  ;;  %v2479_v1 = vld [vmem:[%s3150_s5 + $0x8] sm:$0xff] (!%p475_p2)   ;;  %v2480_v2 = vld [vmem:[%s3150_s5 + $0x10] sm:$0xff] (!%p475_p2)  }
   0x6   : > { %478 = sbr.rel (%p475_p2) target bundleno = 1107 (0x453), region = 76  ;;  %p543_p3 = scmp.lt.s32.totalorder (!%p475_p2), %s2115_s22, 31  ;;  %2278 = vmatprep.subr.bf16.mxu0 (!%p475_p2), %v2478_v0  ;;  %v2481_v3 = vld [vmem:[%s3150_s5 + $0x18] sm:$0xff] (!%p475_p2)   ;;  %v2482_v5 = vld [vmem:[%s3150_s5 + $0x20] sm:$0xff] (!%p475_p2)   ;;  %v2483_v6 = vld [vmem:[%s3150_s5 + $0x28] sm:$0xff] (!%p475_p2)  }
   0x7   : > { %2279 = vmatpush3.bf16.msra.mxu0 (!%p475_p2), %v2478_v0  ;;  %v2484_v7 = vld [vmem:[%s3150_s5 + $0x30] sm:$0xff] (!%p475_p2)   ;;  %v2485_v8 = vld [vmem:[%s3150_s5 + $0x38] sm:$0xff] (!%p475_p2)   ;;  %v2488_v9 = vld [vmem:[%s3149_s4] sm:$0xff] (!%p475_p2)  }
   0x8   : > { %2280 = vmatprep.subr.bf16.mxu0 (!%p475_p2), %v2479_v1  ;;  %v2489_v12 = vld [vmem:[%s3149_s4 + $0x8] sm:$0xff] (!%p475_p2)   ;;  %v2492_v13 = vld [vmem:[%s3149_s4 + $0x10] sm:$0xff] (!%p475_p2)   ;;  %v2493_v16 = vld [vmem:[%s3149_s4 + $0x18] sm:$0xff] (!%p475_p2)  }
   0x9   : > { %v2496_v17 = vld [vmem:[%s3149_s4 + $0x20] sm:$0xff] (!%p475_p2)   ;;  %v2497_v19 = vld [vmem:[%s3149_s4 + $0x28] sm:$0xff] (!%p475_p2)   ;;  %v2500_v24 = vld [vmem:[%s3149_s4 + $0x30] sm:$0xff] (!%p475_p2)  }
   0xa   : > { %v2526_v21 = vld [vmem:[%s3153_s8] sm:$0xff] (!%p475_p2)   ;;  %v2527_v22 = vld [vmem:[%s3153_s8 + $0x8] sm:$0xff] (!%p475_p2)   ;;  %v2528_v26 = vld [vmem:[%s3153_s8 + $0x10] sm:$0xff] (!%p475_p2)  }
   0xb   : > { %2281 = vmatpush3.bf16.msra.mxu0 (!%p475_p2), %v2479_v1  ;;  %2374 = vmatprep.subr.bf16.mxu1 (!%p475_p2), %v2526_v21  ;;  %v2501_v27 = vld [vmem:[%s3149_s4 + $0x38] sm:$0xff] (!%p475_p2)   ;;  %v2504_v29 = vld [vmem:[%s3151_s6] sm:$0xff] (!%p475_p2)   ;;  %v2505_v33 = vld [vmem:[%s3151_s6 + $0x8] sm:$0xff] (!%p475_p2)  }
   0xc   : > { %2282 = vmatprep.subr.bf16.mxu0 (!%p475_p2), %v2480_v2  ;;  %2375 = vmatpush3.bf16.msra.mxu1 (!%p475_p2), %v2526_v21  ;;  %v2529_v28 = vld [vmem:[%s3153_s8 + $0x18] sm:$0xff] (!%p475_p2)   ;;  %v2530_v30 = vld [vmem:[%s3153_s8 + $0x20] sm:$0xff] (!%p475_p2)   ;;  %v2531_v34 = vld [vmem:[%s3153_s8 + $0x28] sm:$0xff] (!%p475_p2)  }
   0xd   : > { %s3162_s22 = smov (!%p543_p3, %s2115_s22), 31  ;;  %2376 = vmatprep.subr.bf16.mxu1 %v2527_v22  ;;  %v2508_v35 = vld [vmem:[%s3151_s6 + $0x10] sm:$0xff]   ;;  %v2509_v38 = vld [vmem:[%s3151_s6 + $0x18] sm:$0xff]   ;;  %v2512_v39 = vld [vmem:[%s3151_s6 + $0x20] sm:$0xff]  }
   0xe   : > { %s2682_s27 = sshll.u32 %s3162_s22, 2  ;;  %v2513_v42 = vld [vmem:[%s3151_s6 + $0x28] sm:$0xff]   ;;  %v2516_v43 = vld [vmem:[%s3151_s6 + $0x30] sm:$0xff]   ;;  %v2517_v46 = vld [vmem:[%s3151_s6 + $0x38] sm:$0xff]  }
   0xf   : > { %s2688_s30 = scalar_lea.vmem %s3146_s1, %s2682_s27  ;;  %2283 = vmatpush3.bf16.msra.mxu0 %v2480_v2  ;;  %s2707_s29 = scalar_lea.vmem %s3145_s0, %s2682_s27  ;;  %v2532_v54 = vld [vmem:[%s3153_s8 + $0x30] sm:$0xff]   ;;  %v2533_v55 = vld [vmem:[%s3153_s8 + $0x38] sm:$0xff]   ;;  %v2534_v56 = vld [vmem:[%s3155_s10] sm:$0xff]  }
  0x10   : > { %v2486_v4 = vld [vmem:[%s2688_s30] sm:$0xff]   ;;  %2284 = vmatprep.subr.bf16.mxu0 %v2481_v3  ;;  %v2487_v10 = vld [vmem:[%s2688_s30 + $0x8] sm:$0xff]   ;;  %v2490_v11 = vld [vmem:[%s2688_s30 + $0x10] sm:$0xff]   ;;  %s2729_s16 = scalar_lea.vmem %s3147_s2, %s2682_s27  ;;  %2377 = vmatpush3.bf16.msra.mxu1 %v2527_v22 }
  0x11   : > { %2294 = vmatprep.mubr.bf16.mxu0 %v2486_v4  ;;  %v2491_v14 = vld [vmem:[%s2688_s30 + $0x18] sm:$0xff]   ;;  %v2494_v15 = vld [vmem:[%s2688_s30 + $0x20] sm:$0xff]   ;;  %v2495_v18 = vld [vmem:[%s2688_s30 + $0x28] sm:$0xff]   ;;  %2378 = vmatprep.subr.bf16.mxu1 %v2528_v26 }
  0x12   : > { %v2498_v20 = vld [vmem:[%s2688_s30 + $0x30] sm:$0xff]   ;;  %v2499_v23 = vld [vmem:[%s2688_s30 + $0x38] sm:$0xff]   ;;  %v2502_v25 = vld [vmem:[%s2707_s29] sm:$0xff]  }
  0x13   : > { %2285 = vmatpush3.bf16.msra.mxu0 %v2481_v3  ;;  %v2503_v31 = vld [vmem:[%s2707_s29 + $0x8] sm:$0xff]   ;;  %v2506_v32 = vld [vmem:[%s2707_s29 + $0x10] sm:$0xff]   ;;  %v2507_v36 = vld [vmem:[%s2707_s29 + $0x18] sm:$0xff]  }
  0x14   : > { %2286 = vmatprep.subr.bf16.mxu0 %v2482_v5  ;;  %2379 = vmatpush3.bf16.msra.mxu1 %v2528_v26  ;;  %v2510_v37 = vld [vmem:[%s2707_s29 + $0x20] sm:$0xff]   ;;  %v2511_v40 = vld [vmem:[%s2707_s29 + $0x28] sm:$0xff]   ;;  %v2514_v41 = vld [vmem:[%s2707_s29 + $0x30] sm:$0xff]  }
  0x15   : > { %2380 = vmatprep.subr.bf16.mxu1 %v2529_v28  ;;  %v2515_v44 = vld [vmem:[%s2707_s29 + $0x38] sm:$0xff]   ;;  %v2518_v45 = vld [vmem:[%s2729_s16] sm:$0xff]   ;;  %v2519_v47 = vld [vmem:[%s2729_s16 + $0x8] sm:$0xff]   ;;  %s3016_s29 = sshll.u32 %s3162_s22, 3 }
  0x16   : > { %v2520_v48 = vld [vmem:[%s2729_s16 + $0x10] sm:$0xff]   ;;  %v2521_v49 = vld [vmem:[%s2729_s16 + $0x18] sm:$0xff]   ;;  %v2522_v50 = vld [vmem:[%s2729_s16 + $0x20] sm:$0xff]   ;;  %s3027_s28 = scalar_lea.vmem %s3148_s3, %s3016_s29  ;;  %s3040_s20 = scalar_lea.vmem %s3159_s14, %s3016_s29 }
  0x17   : > { %2287 = vmatpush3.bf16.msra.mxu0 %v2482_v5  ;;  %v2523_v51 = vld [vmem:[%s2729_s16 + $0x28] sm:$0xff]   ;;  %v2524_v52 = vld [vmem:[%s2729_s16 + $0x30] sm:$0xff]   ;;  %v2525_v53 = vld [vmem:[%s2729_s16 + $0x38] sm:$0xff]   ;;  %s3049_s24 = scalar_lea.vmem %s3160_s15, %s3016_s29 }
  0x18   : > { %2288 = vmatprep.subr.bf16.mxu0 %v2483_v6  ;;  %2381 = vmatpush3.bf16.msra.mxu1 %v2529_v28  ;;  %v2819_v57 = vld [vmem:[%s3152_s7] ss:$0 sm:$0xff] }
  0x19   : > { %2382 = vmatprep.subr.bf16.mxu1 %v2530_v30 }
  0x1b   : > { %2289 = vmatpush3.bf16.msra.mxu0 %v2483_v6 }
  0x1c   : > { %2290 = vmatprep.subr.bf16.mxu0 %v2484_v7  ;;  %2383 = vmatpush3.bf16.msra.mxu1 %v2530_v30 }
  0x1d   : > { %2384 = vmatprep.subr.bf16.mxu1 %v2531_v34 }
  0x1f   : > { %2291 = vmatpush3.bf16.msra.mxu0 %v2484_v7 }
  0x20   : > { %2292 = vmatprep.subr.bf16.mxu0 %v2485_v8  ;;  %2385 = vmatpush3.bf16.msra.mxu1 %v2531_v34 }
  0x21   : > { %2386 = vmatprep.subr.bf16.mxu1 %v2532_v54 }
  0x23   : > { %2293 = vmatpush3.bf16.msra.mxu0 %v2485_v8 }
  0x24   : > { %2310 = vmatprep.subr.bf16.mxu0 %v2488_v9  ;;  %2387 = vmatpush3.bf16.msra.mxu1 %v2532_v54 }
  0x25   : > { %2388 = vmatprep.subr.bf16.mxu1 %v2533_v55 }
  0x26   : > { %2295 = vmatmul.mubr.bf16.vlgmr.msra.gmra.mrb[0].mxu0 %v2487_v10 }
  0x27   : > { %2311 = vmatpush3.bf16.msra.mxu0 %v2488_v9  ;;  %2298 = vmatprep.mubr.bf16.mxu0 %v2490_v11  ;;  %v2535_v11 = vld [vmem:[%s3155_s10 + $0x8] sm:$0xff]  }
  0x28   : > { %2312 = vmatprep.subr.bf16.mxu0 %v2489_v12  ;;  %2389 = vmatpush3.bf16.msra.mxu1 %v2533_v55  ;;  %v2540_v55 = vld [vmem:[%s3155_s10 + $0x30] sm:$0xff]  }
  0x29   : > { %2406 = vmatprep.subr.bf16.mxu1 %v2534_v56 }
  0x2b   : > { %2313 = vmatpush3.bf16.msra.mxu0 %v2489_v12 }
  0x2c   : > { %2314 = vmatprep.subr.bf16.mxu0 %v2492_v13 }
  0x2e   : > { %2299 = vmatmul.mubr.bf16.gmra.mrb[4].mxu0 %v2491_v14 }
  0x2f   : > { %2315 = vmatpush3.bf16.msra.mxu0 %v2492_v13  ;;  %2302 = vmatprep.mubr.bf16.mxu0 %v2494_v15 }
  0x30   : > { %2316 = vmatprep.subr.bf16.mxu0 %v2493_v16 }
  0x33   : > { %2317 = vmatpush3.bf16.msra.mxu0 %v2493_v16 }
  0x34   : > { %2318 = vmatprep.subr.bf16.mxu0 %v2496_v17 }
  0x36   : > { %2303 = vmatmul.mubr.bf16.gmra.mrb[8].mxu0 %v2495_v18 }
  0x37   : > { %2319 = vmatpush3.bf16.msra.mxu0 %v2496_v17  ;;  %2306 = vmatprep.mubr.bf16.mxu0 %v2498_v20 }
  0x38   : > { %2320 = vmatprep.subr.bf16.mxu0 %v2497_v19 }
  0x3b   : > { %2321 = vmatpush3.bf16.msra.mxu0 %v2497_v19  ;;  %v2536_v19 = vld [vmem:[%s3155_s10 + $0x10] sm:$0xff]  }
  0x3c   : > { %2322 = vmatprep.subr.bf16.mxu0 %v2500_v24 }
  0x3e   : > { %2307 = vmatmul.mubr.bf16.gmra.mrb[12].mxu0 %v2499_v23 }
  0x3f   : > { %2323 = vmatpush3.bf16.msra.mxu0 %v2500_v24  ;;  %2326 = vmatprep.mubr.bf16.mxu0 %v2502_v25 }
  0x40   : > { %2324 = vmatprep.subr.bf16.mxu0 %v2501_v27 }
  0x43   : > { %2325 = vmatpush3.bf16.msra.mxu0 %v2501_v27  ;;  %v2537_v27 = vld [vmem:[%s3155_s10 + $0x18] sm:$0xff]  }
  0x44   : > { %2342 = vmatprep.subr.bf16.mxu0 %v2504_v29 }
  0x46   : > { %2327 = vmatmul.mubr.bf16.vlgmr.msra.gmra.mrb[0].mxu0 %v2503_v31 }
  0x47   : > { %2343 = vmatpush3.bf16.msra.mxu0 %v2504_v29  ;;  %2330 = vmatprep.mubr.bf16.mxu0 %v2506_v32 }
  0x48   : > { %2344 = vmatprep.subr.bf16.mxu0 %v2505_v33 }
  0x4b   : > { %2345 = vmatpush3.bf16.msra.mxu0 %v2505_v33 }
  0x4c   : > { %2346 = vmatprep.subr.bf16.mxu0 %v2508_v35 }
  0x4e   : > { %2331 = vmatmul.mubr.bf16.gmra.mrb[4].mxu0 %v2507_v36 }
  0x4f   : > { %2347 = vmatpush3.bf16.msra.mxu0 %v2508_v35  ;;  %2334 = vmatprep.mubr.bf16.mxu0 %v2510_v37  ;;  %v2538_v35 = vld [vmem:[%s3155_s10 + $0x20] sm:$0xff]  }
  0x50   : > { %2348 = vmatprep.subr.bf16.mxu0 %v2509_v38 }
  0x53   : > { %2349 = vmatpush3.bf16.msra.mxu0 %v2509_v38 }
  0x54   : > { %2350 = vmatprep.subr.bf16.mxu0 %v2512_v39 }
  0x56   : > { %2335 = vmatmul.mubr.bf16.gmra.mrb[8].mxu0 %v2511_v40 }
  0x57   : > { %2351 = vmatpush3.bf16.msra.mxu0 %v2512_v39  ;;  %2338 = vmatprep.mubr.bf16.mxu0 %v2514_v41 }
  0x58   : > { %2352 = vmatprep.subr.bf16.mxu0 %v2513_v42 }
  0x5b   : > { %2353 = vmatpush3.bf16.msra.mxu0 %v2513_v42 }
  0x5c   : > { %2354 = vmatprep.subr.bf16.mxu0 %v2516_v43 }
  0x5e   : > { %2339 = vmatmul.mubr.bf16.gmra.mrb[12].mxu0 %v2515_v44 }
  0x5f   : > { %2355 = vmatpush3.bf16.msra.mxu0 %v2516_v43  ;;  %2358 = vmatprep.mubr.bf16.mxu0 %v2518_v45  ;;  %v2539_v43 = vld [vmem:[%s3155_s10 + $0x28] sm:$0xff]  }
  0x60   : > { %2356 = vmatprep.subr.bf16.mxu0 %v2517_v46 }
  0x63   : > { %2357 = vmatpush3.bf16.msra.mxu0 %v2517_v46 }
  0x66   : > { %2359 = vmatmul.mubr.bf16.vlgmr.msra.gmra.mrb[0].mxu0 %v2519_v47 }
  0x67   : > { %2362 = vmatprep.mubr.bf16.mxu0 %v2520_v48 }
  0x6e   : > { %2363 = vmatmul.mubr.bf16.gmra.mrb[4].mxu0 %v2521_v49 }
  0x6f   : > { %2366 = vmatprep.mubr.bf16.mxu0 %v2522_v50 }
  0x76   : > { %2367 = vmatmul.mubr.bf16.gmra.mrb[8].mxu0 %v2523_v51 }
  0x77   : > { %2370 = vmatprep.mubr.bf16.mxu0 %v2524_v52 }
  0x7e   : > { %2371 = vmatmul.mubr.bf16.gmra.mrb[12].mxu0 %v2525_v53 }
 0x139   : > { %v2360_v58 = vpop.f32.mrb[0].mxu0 }
 0x13a   : > { %v1279_v59 = vadd.f32 %v2360_v58, %v2819_v57  ;;  %v1191_v60 = vpop.f32.mrb[1].mxu0 }
 0x13b   : > { %v1277_v61 = vadd.f32 %v2819_v57, %v1191_v60  ;;  %v2361_v62 = vpop.f32.mrb[2].mxu0 }
 0x13c   : > { %v1280_v63 = vadd.f32 %v2361_v62, %v2819_v57  ;;  %v1194_v0 = vpop.f32.mrb[3].mxu0  ;;  %v1295_v2 = vmax.f32 %v1279_v59, 0.0 }
 0x13d   : > { %v1278_v1 = vadd.f32 %v2819_v57, %v1194_v0  ;;  %v1293_v4 = vmax.f32 %v1277_v61, 0.0 }
 0x13e   : > { %v1296_v3 = vmax.f32 %v1280_v63, 0.0 }
 0x13f   : > { %v1294_v5 = vmax.f32 %v1278_v1, 0.0 }
 0x140   : > { %v1311_v6 = vpack.c.bf16 %v1296_v3, %v1295_v2 }
 0x141   : > { %v2364_v7 = vpop.f32.mrb[4].mxu0  ;;  %v1310_v8 = vpack.c.bf16 %v1294_v5, %v1293_v4 }
 0x142   : > { %v1283_v9 = vadd.f32 %v2364_v7, %v2819_v57  ;;  %v1207_v10 = vpop.f32.mrb[5].mxu0 }
 0x143   : > { %v1281_v12 = vadd.f32 %v2819_v57, %v1207_v10  ;;  %v2365_v13 = vpop.f32.mrb[6].mxu0  ;;  %2390 = vmatprep.mubr.bf16.mxu1 %v1310_v8 }
 0x144   : > { %v1284_v14 = vadd.f32 %v2365_v13, %v2819_v57  ;;  %v1210_v15 = vpop.f32.mrb[7].mxu0  ;;  %2391 = vmatmul.mubr.bf16.vlgmr.msra.gmra.mrb[0].mxu1 %v1311_v6  ;;  %v1299_v17 = vmax.f32 %v1283_v9, 0.0 }
 0x145   : > { %v1282_v16 = vadd.f32 %v2819_v57, %v1210_v15  ;;  %2407 = vmatpush3.bf16.msra.mxu1 %v2534_v56  ;;  %v1297_v20 = vmax.f32 %v1281_v12, 0.0  ;;  %v2541_v56 = vld [vmem:[%s3155_s10 + $0x38] sm:$0xff]  }
 0x146   : > { %v1300_v18 = vmax.f32 %v1284_v14, 0.0  ;;  %2408 = vmatprep.subr.bf16.mxu1 %v2535_v11 }
 0x147   : > { %v1298_v21 = vmax.f32 %v1282_v16, 0.0 }
 0x148   : > { %v1313_v22 = vpack.c.bf16 %v1300_v18, %v1299_v17 }
 0x149   : > { %v1312_v23 = vpack.c.bf16 %v1298_v21, %v1297_v20  ;;  %v2368_v24 = vpop.f32.mrb[8].mxu0  ;;  %2409 = vmatpush3.bf16.msra.mxu1 %v2535_v11 }
 0x14a   : > { %v1287_v25 = vadd.f32 %v2368_v24, %v2819_v57  ;;  %v1223_v26 = vpop.f32.mrb[9].mxu0  ;;  %2410 = vmatprep.subr.bf16.mxu1 %v2536_v19 }
 0x14b   : > { %v1285_v28 = vadd.f32 %v2819_v57, %v1223_v26  ;;  %v2369_v29 = vpop.f32.mrb[10].mxu0  ;;  %2394 = vmatprep.mubr.bf16.mxu1 %v1312_v23 }
 0x14c   : > { %v1288_v30 = vadd.f32 %v2369_v29, %v2819_v57  ;;  %v1226_v31 = vpop.f32.mrb[11].mxu0  ;;  %2395 = vmatmul.mubr.bf16.gmra.mrb[4].mxu1 %v1313_v22  ;;  %v1303_v33 = vmax.f32 %v1287_v25, 0.0 }
 0x14d   : > { %v1286_v32 = vadd.f32 %v2819_v57, %v1226_v31  ;;  %2411 = vmatpush3.bf16.msra.mxu1 %v2536_v19  ;;  %v1301_v36 = vmax.f32 %v1285_v28, 0.0 }
 0x14e   : > { %v1304_v34 = vmax.f32 %v1288_v30, 0.0  ;;  %2412 = vmatprep.subr.bf16.mxu1 %v2537_v27 }
 0x14f   : > { %v1302_v37 = vmax.f32 %v1286_v32, 0.0 }
 0x150   : > { %v1315_v38 = vpack.c.bf16 %v1304_v34, %v1303_v33 }
 0x151   : > { %v1314_v39 = vpack.c.bf16 %v1302_v37, %v1301_v36  ;;  %v2372_v40 = vpop.f32.mrb[12].mxu0  ;;  %2413 = vmatpush3.bf16.msra.mxu1 %v2537_v27 }
 0x152   : > { %v1291_v41 = vadd.f32 %v2372_v40, %v2819_v57  ;;  %v1239_v42 = vpop.f32.mrb[13].mxu0  ;;  %2414 = vmatprep.subr.bf16.mxu1 %v2538_v35 }
 0x153   : > { %v1289_v44 = vadd.f32 %v2819_v57, %v1239_v42  ;;  %v2373_v45 = vpop.f32.mrb[14].mxu0  ;;  %2398 = vmatprep.mubr.bf16.mxu1 %v1314_v39 }
 0x154   : > { %v1292_v46 = vadd.f32 %v2373_v45, %v2819_v57  ;;  %v1242_v47 = vpop.f32.mrb[15].mxu0  ;;  %2399 = vmatmul.mubr.bf16.gmra.mrb[8].mxu1 %v1315_v38  ;;  %v1307_v49 = vmax.f32 %v1291_v41, 0.0 }
 0x155   : > { %v1290_v48 = vadd.f32 %v2819_v57, %v1242_v47  ;;  %2415 = vmatpush3.bf16.msra.mxu1 %v2538_v35  ;;  %v1305_v51 = vmax.f32 %v1289_v44, 0.0  ;;  %v2176_v57 = vld [vmem:[%s3154_s9] ss:$0 sm:$0xff] }
 0x156   : > { %v1308_v50 = vmax.f32 %v1292_v46, 0.0  ;;  %2416 = vmatprep.subr.bf16.mxu1 %v2539_v43 }
 0x157   : > { %v1306_v52 = vmax.f32 %v1290_v48, 0.0 }
 0x158   : > { %v1317_v53 = vpack.c.bf16 %v1308_v50, %v1307_v49  ;;  %v2185_v50 = vld [vmem:[%s3156_s11] ss:$0 sm:$0xff] }
 0x159   : > { %v1316_v54 = vpack.c.bf16 %v1306_v52, %v1305_v51  ;;  %2417 = vmatpush3.bf16.msra.mxu1 %v2539_v43 }
 0x15a   : > { %2418 = vmatprep.subr.bf16.mxu1 %v2540_v55 }
 0x15b   : > { %2402 = vmatprep.mubr.bf16.mxu1 %v1316_v54 }
 0x15c   : > { %2403 = vmatmul.mubr.bf16.gmra.mrb[12].mxu1 %v1317_v53 }
 0x15d   : > { %2419 = vmatpush3.bf16.msra.mxu1 %v2540_v55 }
 0x15e   : > { %2420 = vmatprep.subr.bf16.mxu1 %v2541_v56 }
 0x161   : > { %2421 = vmatpush3.bf16.msra.mxu1 %v2541_v56 }
 0x217   : > { %v2392_v58 = vpop.f32.mrb[0].mxu1 }
 0x218   : > { %v1431_v59 = vadd.f32 %v2392_v58, %v2176_v57  ;;  %v1422_v60 = vpop.f32.mrb[1].mxu1 }
 0x219   : > { %v1423_v61 = vadd.f32 %v2176_v57, %v1422_v60  ;;  %v2393_v62 = vpop.f32.mrb[2].mxu1 }
 0x21a   : > { %v1434_v63 = vadd.f32 %v2393_v62, %v2176_v57  ;;  %v1425_v0 = vpop.f32.mrb[3].mxu1  ;;  %v1487_v2 = vmax.f32 %v1431_v59, 0.0 }
 0x21b   : > { %v1426_v1 = vadd.f32 %v2176_v57, %v1425_v0  ;;  %v1485_v4 = vmax.f32 %v1423_v61, 0.0 }
 0x21c   : > { %v1488_v3 = vmax.f32 %v1434_v63, 0.0 }
 0x21d   : > { %v1486_v5 = vmax.f32 %v1426_v1, 0.0 }
 0x21e   : > { %v1503_v6 = vpack.c.bf16 %v1488_v3, %v1487_v2 }
 0x21f   : > { %v1502_v7 = vpack.c.bf16 %v1486_v5, %v1485_v4  ;;  %v2396_v8 = vpop.f32.mrb[4].mxu1 }
 0x220   : > { %v1447_v9 = vadd.f32 %v2396_v8, %v2176_v57  ;;  %v1438_v10 = vpop.f32.mrb[5].mxu1 }
 0x221   : > { %v1439_v11 = vadd.f32 %v2176_v57, %v1438_v10  ;;  %v2397_v12 = vpop.f32.mrb[6].mxu1  ;;  %2422 = vmatprep.mubr.bf16.mxu1 %v1502_v7 }
 0x222   : > { %v1450_v13 = vadd.f32 %v2397_v12, %v2176_v57  ;;  %v1441_v14 = vpop.f32.mrb[7].mxu1  ;;  %2423 = vmatmul.mubr.bf16.vlgmr.msra.gmra.mrb[16].mxu1 %v1503_v6  ;;  %v1491_v16 = vmax.f32 %v1447_v9, 0.0 }
 0x223   : > { %v1442_v15 = vadd.f32 %v2176_v57, %v1441_v14  ;;  %v1489_v18 = vmax.f32 %v1439_v11, 0.0 }
 0x224   : > { %v1492_v17 = vmax.f32 %v1450_v13, 0.0 }
 0x225   : > { %v1490_v19 = vmax.f32 %v1442_v15, 0.0 }
 0x226   : > { %v1505_v20 = vpack.c.bf16 %v1492_v17, %v1491_v16 }
 0x227   : > { %v1504_v21 = vpack.c.bf16 %v1490_v19, %v1489_v18  ;;  %v2400_v22 = vpop.f32.mrb[8].mxu1  ;;  %v1677_v19 = vlaneseq }
 0x228   : > { %v1463_v23 = vadd.f32 %v2400_v22, %v2176_v57  ;;  %v1454_v24 = vpop.f32.mrb[9].mxu1 }
 0x229   : > { %v1455_v25 = vadd.f32 %v2176_v57, %v1454_v24  ;;  %v2401_v26 = vpop.f32.mrb[10].mxu1  ;;  %2426 = vmatprep.mubr.bf16.mxu1 %v1504_v21 }
 0x22a   : > { %v1466_v27 = vadd.f32 %v2401_v26, %v2176_v57  ;;  %v1457_v28 = vpop.f32.mrb[11].mxu1  ;;  %2427 = vmatmul.mubr.bf16.gmra.mrb[20].mxu1 %v1505_v20  ;;  %v1495_v30 = vmax.f32 %v1463_v23, 0.0  ;;  %v2903_v20 = vand.u32 127, %v1677_v19 }
 0x22b   : > { %v1458_v29 = vadd.f32 %v2176_v57, %v1457_v28  ;;  %v1493_v32 = vmax.f32 %v1455_v25, 0.0 }
 0x22c   : > { %v1496_v31 = vmax.f32 %v1466_v27, 0.0  ;;  %vm1679_vm0 = vcmp.lt.s32.totalorder %v2903_v20, 32 }
 0x22d   : > { %v1494_v33 = vmax.f32 %v1458_v29, 0.0 }
 0x22e   : > { %v1507_v34 = vpack.c.bf16 %v1496_v31, %v1495_v30 }
 0x22f   : > { %v1506_v35 = vpack.c.bf16 %v1494_v33, %v1493_v32  ;;  %v2404_v36 = vpop.f32.mrb[12].mxu1 }
 0x230   : > { %v1479_v37 = vadd.f32 %v2404_v36, %v2176_v57  ;;  %v1470_v38 = vpop.f32.mrb[13].mxu1 }
 0x231   : > { %v1471_v39 = vadd.f32 %v2176_v57, %v1470_v38  ;;  %v2405_v40 = vpop.f32.mrb[14].mxu1  ;;  %2430 = vmatprep.mubr.bf16.mxu1 %v1506_v35 }
 0x232   : > { %v1482_v41 = vadd.f32 %v2405_v40, %v2176_v57  ;;  %v1473_v42 = vpop.f32.mrb[15].mxu1  ;;  %2431 = vmatmul.mubr.bf16.gmra.mrb[24].mxu1 %v1507_v34  ;;  %v1499_v44 = vmax.f32 %v1479_v37, 0.0 }
 0x233   : > { %v1474_v43 = vadd.f32 %v2176_v57, %v1473_v42  ;;  %v1497_v46 = vmax.f32 %v1471_v39, 0.0 }
 0x234   : > { %v1500_v45 = vmax.f32 %v1482_v41, 0.0 }
 0x235   : > { %v1498_v47 = vmax.f32 %v1474_v43, 0.0 }
 0x236   : > { %v1509_v48 = vpack.c.bf16 %v1500_v45, %v1499_v44 }
 0x237   : > { %v1508_v49 = vpack.c.bf16 %v1498_v47, %v1497_v46 }
 0x239   : > { %2434 = vmatprep.mubr.bf16.mxu1 %v1508_v49 }
 0x23a   : > { %2435 = vmatmul.mubr.bf16.gmra.mrb[28].mxu1 %v1509_v48 }
 0x2f5   : > { %v2424_v51 = vpop.f32.mrb[16].mxu1 }
 0x2f6   : > { %v1623_v52 = vadd.f32 %v2424_v51, %v2185_v50  ;;  %v1614_v53 = vpop.f32.mrb[17].mxu1 }
 0x2f7   : > { %v1615_v54 = vadd.f32 %v2185_v50, %v1614_v53  ;;  %v2425_v55 = vpop.f32.mrb[18].mxu1 }
 0x2f8   : > { %1684 = vadd.xlane.f32.xlu1 %v1623_v52  ;;  %v1617_v56 = vpop.f32.mrb[19].mxu1  ;;  %v1626_v57 = vadd.f32 %v2425_v55, %v2185_v50 }
 0x2f9   : > { %1680 = vadd.xlane.f32.xlu0 %v1615_v54  ;;  %v2864_v58 = vadd.f32 %v2185_v50, %v1617_v56 }
 0x2fc   : > { %1686 = vadd.xlane.f32.xlu1 %v1626_v57 }
 0x2fd   : > { %v2428_v59 = vpop.f32.mrb[20].mxu1  ;;  %1682 = vadd.xlane.f32.xlu0 %v2864_v58 }
 0x2fe   : > { %v2867_v60 = vadd.f32 %v2428_v59, %v2185_v50  ;;  %v1630_v61 = vpop.f32.mrb[21].mxu1 }
 0x2ff   : > { %v2429_v62 = vpop.f32.mrb[22].mxu1  ;;  %v2873_v1 = vadd.f32 %v2185_v50, %v1630_v61 }
 0x300   : > { %v2869_v63 = vadd.f32 %v2429_v62, %v2185_v50  ;;  %v1633_v0 = vpop.f32.mrb[23].mxu1 }
 0x301   : > { %1692 = vadd.xlane.f32.xlu0 %v2867_v60  ;;  %v2875_v2 = vadd.f32 %v2185_v50, %v1633_v0 }
 0x302   : > { %1694 = vadd.xlane.f32.xlu1 %v2869_v63 }
 0x305   : > { %v2432_v3 = vpop.f32.mrb[24].mxu1  ;;  %1688 = vadd.xlane.f32.xlu0 %v2873_v1 }
 0x306   : > { %v2878_v4 = vadd.f32 %v2432_v3, %v2185_v50  ;;  %v1646_v5 = vpop.f32.mrb[25].mxu1  ;;  %1690 = vadd.xlane.f32.xlu1 %v2875_v2 }
 0x307   : > { %v2433_v6 = vpop.f32.mrb[26].mxu1  ;;  %v2885_v9 = vadd.f32 %v2185_v50, %v1646_v5 }
 0x308   : > { %v2881_v7 = vadd.f32 %v2433_v6, %v2185_v50  ;;  %v1649_v8 = vpop.f32.mrb[27].mxu1 }
 0x309   : > { %1700 = vadd.xlane.f32.xlu0 %v2878_v4  ;;  %v2887_v10 = vadd.f32 %v2185_v50, %v1649_v8 }
 0x30a   : > { %1702 = vadd.xlane.f32.xlu1 %v2881_v7 }
 0x30d   : > { %1696 = vadd.xlane.f32.xlu0 %v2885_v9  ;;  %v2436_v11 = vpop.f32.mrb[28].mxu1 }
 0x30e   : > { %1698 = vadd.xlane.f32.xlu1 %v2887_v10  ;;  %v1662_v12 = vpop.f32.mrb[29].mxu1  ;;  %v2896_v17 = vadd.f32 %v2436_v11, %v2185_v50 }
 0x30f   : > { %v2891_v13 = vadd.f32 %v2185_v50, %v1662_v12  ;;  %v2437_v14 = vpop.f32.mrb[30].mxu1 }
 0x310   : > { %v1665_v15 = vpop.f32.mrb[31].mxu1  ;;  %v2899_v18 = vadd.f32 %v2437_v14, %v2185_v50 }
 0x311   : > { %v2893_v16 = vadd.f32 %v2185_v50, %v1665_v15  ;;  %1704 = vadd.xlane.f32.xlu0 %v2891_v13 }
 0x313   : > { %1706 = vadd.xlane.f32.xlu1 %v2893_v16 }
 0x315   : > { %1708 = vadd.xlane.f32.xlu0 %v2896_v17 }
 0x317   : > { %1710 = vadd.xlane.f32.xlu1 %v2899_v18 }
 0x385   : > { %v1685_v21 = vpop.xlane.xlu1 %1684 }
 0x386   : > { %v1714_v22 = vmul.f32 0.03125, %v1685_v21  ;;  %v1681_v23 = vpop.xlane.xlu0 %1680 }
 0x387   : > { %v1712_v24 = vmul.f32 0.03125, %v1681_v23 }
 0x388   : > { %v1730_v25 = vsub.f32 %v1623_v52, %v1714_v22 }
 0x389   : > { %v1728_v26 = vsub.f32 %v1615_v54, %v1712_v24  ;;  %v1687_v27 = vpop.xlane.xlu1 %1686 }
 0x38a   : > { %v1715_v28 = vmul.f32 0.03125, %v1687_v27  ;;  %v1683_v29 = vpop.xlane.xlu0 %1682  ;;  %v2908_v30 = vsel %vm1679_vm0, %v1730_v25, 0.0 }
 0x38b   : > { %v1713_v31 = vmul.f32 0.03125, %v1683_v29  ;;  %v1764_v32 = vmul.f32 %v2908_v30, %v2908_v30  ;;  %v2914_v34 = vsel %vm1679_vm0, %v1728_v26, 0.0 }
 0x38c   : > { %v1731_v33 = vsub.f32 %v1626_v57, %v1715_v28  ;;  %v1762_v41 = vmul.f32 %v2914_v34, %v2914_v34 }
 0x38d   : > { %v1729_v35 = vsub.f32 %v2864_v58, %v1713_v31  ;;  %1782 = vadd.xlane.f32.xlu0 %v1764_v32 }
 0x38e   : > { %v1693_v36 = vpop.xlane.xlu0 %1692  ;;  %v2919_v37 = vsel %vm1679_vm0, %v1731_v33, 0.0 }
 0x38f   : > { %v1718_v38 = vmul.f32 0.03125, %v1693_v36  ;;  %v1695_v39 = vpop.xlane.xlu1 %1694  ;;  %v1765_v40 = vmul.f32 %v2919_v37, %v2919_v37  ;;  %v2927_v43 = vsel %vm1679_vm0, %v1729_v35, 0.0 }
 0x390   : > { %v1719_v42 = vmul.f32 0.03125, %v1695_v39  ;;  %v1763_v49 = vmul.f32 %v2927_v43, %v2927_v43 }
 0x391   : > { %v1734_v44 = vsub.f32 %v2867_v60, %v1718_v38  ;;  %1784 = vadd.xlane.f32.xlu1 %v1765_v40  ;;  %1778 = vadd.xlane.f32.xlu0 %v1762_v41 }
 0x392   : > { %v1735_v45 = vsub.f32 %v2869_v63, %v1719_v42  ;;  %v1689_v46 = vpop.xlane.xlu0 %1688 }
 0x393   : > { %v1716_v47 = vmul.f32 0.03125, %v1689_v46  ;;  %v1691_v48 = vpop.xlane.xlu1 %1690  ;;  %v2935_v50 = vsel %vm1679_vm0, %v1734_v44, 0.0 }
 0x394   : > { %v1717_v51 = vmul.f32 0.03125, %v1691_v48  ;;  %v1768_v52 = vmul.f32 %v2935_v50, %v2935_v50  ;;  %v2941_v53 = vsel %vm1679_vm0, %v1735_v45, 0.0 }
 0x395   : > { %v1732_v54 = vsub.f32 %v2873_v1, %v1716_v47  ;;  %1780 = vadd.xlane.f32.xlu1 %v1763_v49  ;;  %v1769_v59 = vmul.f32 %v2941_v53, %v2941_v53 }
 0x396   : > { %v1733_v55 = vsub.f32 %v2875_v2, %v1717_v51  ;;  %v1701_v56 = vpop.xlane.xlu0 %1700  ;;  %1790 = vadd.xlane.f32.xlu0 %v1768_v52 }
 0x397   : > { %v1722_v57 = vmul.f32 0.03125, %v1701_v56  ;;  %v1703_v58 = vpop.xlane.xlu1 %1702  ;;  %v2949_v60 = vsel %vm1679_vm0, %v1732_v54, 0.0 }
 0x398   : > { %v1723_v61 = vmul.f32 0.03125, %v1703_v58  ;;  %v1766_v62 = vmul.f32 %v2949_v60, %v2949_v60  ;;  %v2955_v63 = vsel %vm1679_vm0, %v1733_v55, 0.0 }
 0x399   : > { %v1738_v0 = vsub.f32 %v2878_v4, %v1722_v57  ;;  %1792 = vadd.xlane.f32.xlu1 %v1769_v59  ;;  %v1767_v6 = vmul.f32 %v2955_v63, %v2955_v63 }
 0x39a   : > { %v1739_v1 = vsub.f32 %v2881_v7, %v1723_v61  ;;  %v1697_v2 = vpop.xlane.xlu0 %1696  ;;  %1786 = vadd.xlane.f32.xlu0 %v1766_v62 }
 0x39b   : > { %v1720_v3 = vmul.f32 0.03125, %v1697_v2  ;;  %v1699_v5 = vpop.xlane.xlu1 %1698  ;;  %v2963_v8 = vsel %vm1679_vm0, %v1738_v0, 0.0 }
 0x39c   : > { %v1721_v11 = vmul.f32 0.03125, %v1699_v5  ;;  %v1772_v12 = vmul.f32 %v2963_v8, %v2963_v8  ;;  %v2969_v4 = vsel %vm1679_vm0, %v1739_v1, 0.0  ;;  %v3021_v1 = vld [vmem:[%s3157_s12] ss:$0 sm:$0xff] }
 0x39d   : > { %v1736_v7 = vsub.f32 %v2885_v9, %v1720_v3  ;;  %1788 = vadd.xlane.f32.xlu1 %v1767_v6  ;;  %v1773_v21 = vmul.f32 %v2969_v4, %v2969_v4 }
 0x39e   : > { %v1737_v14 = vsub.f32 %v2887_v10, %v1721_v11  ;;  %1798 = vadd.xlane.f32.xlu0 %v1772_v12  ;;  %v1705_v15 = vpop.xlane.xlu0 %1704  ;;  %v3033_v11 = vld [vmem:[%s3158_s13] ss:$0 sm:$0xff] }
 0x39f   : > { %v1724_v19 = vmul.f32 0.03125, %v1705_v15  ;;  %v2977_v22 = vsel %vm1679_vm0, %v1736_v7, 0.0 }
 0x3a0   : > { %v1707_v23 = vpop.xlane.xlu1 %1706  ;;  %v1770_v24 = vmul.f32 %v2977_v22, %v2977_v22  ;;  %v2983_v9 = vsel %vm1679_vm0, %v1737_v14, 0.0 }
 0x3a1   : > { %v1740_v10 = vsub.f32 %v2891_v13, %v1724_v19  ;;  %v1725_v25 = vmul.f32 0.03125, %v1707_v23  ;;  %1800 = vadd.xlane.f32.xlu1 %v1773_v21  ;;  %v1771_v29 = vmul.f32 %v2983_v9, %v2983_v9 }
 0x3a2   : > { %1794 = vadd.xlane.f32.xlu0 %v1770_v24  ;;  %v1709_v26 = vpop.xlane.xlu0 %1708 }
 0x3a3   : > { %v1741_v27 = vsub.f32 %v2893_v16, %v1725_v25  ;;  %v1726_v28 = vmul.f32 0.03125, %v1709_v26  ;;  %v2991_v31 = vsel %vm1679_vm0, %v1740_v10, 0.0 }
 0x3a4   : > { %v1711_v32 = vpop.xlane.xlu1 %1710  ;;  %v1774_v33 = vmul.f32 %v2991_v31, %v2991_v31 }
 0x3a5   : > { %v1742_v13 = vsub.f32 %v2896_v17, %v1726_v28  ;;  %v1727_v35 = vmul.f32 0.03125, %v1711_v32  ;;  %1796 = vadd.xlane.f32.xlu1 %v1771_v29  ;;  %v2998_v36 = vsel %vm1679_vm0, %v1741_v27, 0.0 }
 0x3a6   : > { %1802 = vadd.xlane.f32.xlu0 %v1774_v33  ;;  %v1775_v16 = vmul.f32 %v2998_v36, %v2998_v36 }
 0x3a7   : > { %v1743_v38 = vsub.f32 %v2899_v18, %v1727_v35  ;;  %v3005_v39 = vsel %vm1679_vm0, %v1742_v13, 0.0  ;;  %v1923_v35 = vld [vmem:[%s3027_s28 + $0x18] sm:$0xff] }
 0x3a8   : > { %v1776_v40 = vmul.f32 %v3005_v39, %v3005_v39 }
 0x3a9   : > { %1804 = vadd.xlane.f32.xlu1 %v1775_v16  ;;  %v3011_v17 = vsel %vm1679_vm0, %v1743_v38, 0.0 }
 0x3aa   : > { %1806 = vadd.xlane.f32.xlu0 %v1776_v40  ;;  %v1777_v41 = vmul.f32 %v3011_v17, %v3011_v17 }
 0x3ad   : > { %1808 = vadd.xlane.f32.xlu1 %v1777_v41  ;;  %v1920_v41 = vld [vmem:[%s3027_s28] sm:$0xff] }
 0x41a   : > { %v1783_v42 = vpop.xlane.xlu0 %1782 }
 0x41b   : > { %v1812_v44 = vmul.f32 0.03125, %v1783_v42 }
 0x41d   : > { %v1828_v18 = vadd.f32 1e-05, %v1812_v44 }
 0x41e   : > { %v1785_v45 = vpop.xlane.xlu1 %1784  ;;  %v1779_v46 = vpop.xlane.xlu0 %1778 }
 0x41f   : > { %2542 = vrsqrt.f32 %v1828_v18  ;;  %v1813_v47 = vmul.f32 0.03125, %v1785_v45  ;;  %v1810_v48 = vmul.f32 0.03125, %v1779_v46 }
 0x421   : > { %v1829_v49 = vadd.f32 1e-05, %v1813_v47  ;;  %v1826_v51 = vadd.f32 1e-05, %v1810_v48 }
 0x422   : > { %v1781_v52 = vpop.xlane.xlu1 %1780 }
 0x423   : > { %2544 = vrsqrt.f32 %v1829_v49  ;;  %v1811_v20 = vmul.f32 0.03125, %v1781_v52  ;;  %v1791_v54 = vpop.xlane.xlu0 %1790 }
 0x424   : > { %2546 = vrsqrt.f32 %v1826_v51  ;;  %v1816_v55 = vmul.f32 0.03125, %v1791_v54  ;;  %v1921_v54 = vld [vmem:[%s3027_s28 + $0x8] sm:$0xff] }
 0x425   : > { %v1827_v56 = vadd.f32 1e-05, %v1811_v20 }
 0x426   : > { %v1832_v57 = vadd.f32 1e-05, %v1816_v55  ;;  %v1793_v58 = vpop.xlane.xlu1 %1792 }
 0x427   : > { %2548 = vrsqrt.f32 %v1827_v56  ;;  %v1817_v59 = vmul.f32 0.03125, %v1793_v58  ;;  %v1787_v61 = vpop.xlane.xlu0 %1786  ;;  %v1926_v58 = vld [vmem:[%s3027_s28 + $0x30] sm:$0xff] }
 0x428   : > { %2550 = vrsqrt.f32 %v1832_v57  ;;  %v1814_v62 = vmul.f32 0.03125, %v1787_v61 }
 0x429   : > { %v2543_v0 = vpop.eup %2542  ;;  %v1833_v2 = vadd.f32 1e-05, %v1817_v59 }
 0x42a   : > { %v1860_v3 = vmul.f32 %v2543_v0, %v2908_v30  ;;  %v1830_v5 = vadd.f32 1e-05, %v1814_v62  ;;  %v1789_v6 = vpop.xlane.xlu1 %1788  ;;  %v1922_v30 = vld [vmem:[%s3027_s28 + $0x10] sm:$0xff] }
 0x42b   : > { %2552 = vrsqrt.f32 %v1833_v2  ;;  %v1815_v12 = vmul.f32 0.03125, %v1789_v6  ;;  %v1799_v7 = vpop.xlane.xlu0 %1798 }
 0x42c   : > { %v1883_v14 = vmul.f32 %v3021_v1, %v1860_v3  ;;  %2554 = vrsqrt.f32 %v1830_v5  ;;  %v1820_v15 = vmul.f32 0.03125, %v1799_v7 }
 0x42d   : > { %v2545_v19 = vpop.eup %2544  ;;  %v1831_v21 = vadd.f32 1e-05, %v1815_v12 }
 0x42e   : > { %v2547_v23 = vpop.eup %2546  ;;  %v1906_v24 = vadd.f32 %v3033_v11, %v1883_v14  ;;  %v1861_v10 = vmul.f32 %v2545_v19, %v2919_v37  ;;  %v1836_v25 = vadd.f32 1e-05, %v1820_v15  ;;  %v1801_v26 = vpop.xlane.xlu1 %1800  ;;  %v1927_v15 = vld [vmem:[%s3027_s28 + $0x38] sm:$0xff] }
 0x42f   : > { %v1858_v27 = vmul.f32 %v2547_v23, %v2914_v34  ;;  %2556 = vrsqrt.f32 %v1831_v21  ;;  %v1821_v28 = vmul.f32 0.03125, %v1801_v26  ;;  %v1795_v29 = vpop.xlane.xlu0 %1794  ;;  %v1924_v23 = vld [vmem:[%s3027_s28 + $0x20] sm:$0xff] }
 0x430   : > { %1938 = vst [vmem:[%s3040_s20 + $0x10] sm:$0xff] %v1906_v24  ;;  %v1954_v32 = vadd.f32 %v1922_v30, %v1906_v24  ;;  %v1884_v33 = vmul.f32 %v3021_v1, %v1861_v10  ;;  %2558 = vrsqrt.f32 %v1836_v25  ;;  %v1818_v37 = vmul.f32 0.03125, %v1795_v29 }
 0x431   : > { %v2549_v13 = vpop.eup %2548  ;;  %v1881_v16 = vmul.f32 %v3021_v1, %v1858_v27  ;;  %v1837_v38 = vadd.f32 1e-05, %v1821_v28 }
 0x432   : > { %v2551_v40 = vpop.eup %2550  ;;  %1970 = vst [vmem:[%s3049_s24 + $0x10] sm:$0xff] %v1954_v32  ;;  %v1907_v34 = vadd.f32 %v3033_v11, %v1884_v33  ;;  %v1859_v42 = vmul.f32 %v2549_v13, %v2927_v43  ;;  %v1834_v44 = vadd.f32 1e-05, %v1818_v37  ;;  %v1797_v18 = vpop.xlane.xlu1 %1796  ;;  %v1925_v37 = vld [vmem:[%s3027_s28 + $0x28] sm:$0xff] }
 0x433   : > { %v1904_v45 = vadd.f32 %v3033_v11, %v1881_v16  ;;  %v1864_v46 = vmul.f32 %v2551_v40, %v2935_v50  ;;  %2560 = vrsqrt.f32 %v1837_v38  ;;  %v1819_v47 = vmul.f32 0.03125, %v1797_v18  ;;  %v1803_v48 = vpop.xlane.xlu0 %1802  ;;  %v1930_v38 = vld [vmem:[%s3027_s28 + $0x50] sm:$0xff] }
 0x434   : > { %1939 = vst [vmem:[%s3040_s20 + $0x18] sm:$0xff] %v1907_v34  ;;  %v1955_v49 = vadd.f32 %v1923_v35, %v1907_v34  ;;  %v1882_v51 = vmul.f32 %v3021_v1, %v1859_v42  ;;  %2562 = vrsqrt.f32 %v1834_v44  ;;  %v1822_v52 = vmul.f32 0.03125, %v1803_v48 }
 0x435   : > { %v2553_v43 = vpop.eup %2552  ;;  %1936 = vst [vmem:[%s3040_s20] sm:$0xff] %v1904_v45  ;;  %v1952_v20 = vadd.f32 %v1920_v41, %v1904_v45  ;;  %v1887_v55 = vmul.f32 %v3021_v1, %v1864_v46  ;;  %v1835_v50 = vadd.f32 1e-05, %v1819_v47  ;;  %v1931_v46 = vld [vmem:[%s3027_s28 + $0x58] sm:$0xff] }
 0x436   : > { %v2555_v56 = vpop.eup %2554  ;;  %1971 = vst [vmem:[%s3049_s24 + $0x18] sm:$0xff] %v1955_v49  ;;  %v1905_v57 = vadd.f32 %v3033_v11, %v1882_v51  ;;  %v1865_v59 = vmul.f32 %v2553_v43, %v2941_v53  ;;  %v1838_v61 = vadd.f32 1e-05, %v1822_v52  ;;  %v1805_v62 = vpop.xlane.xlu1 %1804 }
 0x437   : > { %1968 = vst [vmem:[%s3049_s24] sm:$0xff] %v1952_v20  ;;  %v1910_v0 = vadd.f32 %v3033_v11, %v1887_v55  ;;  %v1862_v2 = vmul.f32 %v2555_v56, %v2949_v60  ;;  %2564 = vrsqrt.f32 %v1835_v50  ;;  %v1823_v3 = vmul.f32 0.03125, %v1805_v62  ;;  %v1807_v5 = vpop.xlane.xlu0 %1806  ;;  %v1929_v50 = vld [vmem:[%s3027_s28 + $0x48] sm:$0xff] }
 0x438   : > { %1937 = vst [vmem:[%s3040_s20 + $0x8] sm:$0xff] %v1905_v57  ;;  %v1953_v6 = vadd.f32 %v1921_v54, %v1905_v57  ;;  %v1888_v12 = vmul.f32 %v3021_v1, %v1865_v59  ;;  %2566 = vrsqrt.f32 %v1838_v61  ;;  %v1824_v53 = vmul.f32 0.03125, %v1807_v5  ;;  %v1933_v5 = vld [vmem:[%s3027_s28 + $0x68] sm:$0xff] }
 0x439   : > { %v2557_v7 = vpop.eup %2556  ;;  %1942 = vst [vmem:[%s3040_s20 + $0x30] sm:$0xff] %v1910_v0  ;;  %v1958_v14 = vadd.f32 %v1926_v58, %v1910_v0  ;;  %v1885_v19 = vmul.f32 %v3021_v1, %v1862_v2  ;;  %v1839_v60 = vadd.f32 1e-05, %v1823_v3 }
 0x43a   : > { %v2559_v30 = vpop.eup %2558  ;;  %1969 = vst [vmem:[%s3049_s24 + $0x8] sm:$0xff] %v1953_v6  ;;  %v1911_v21 = vadd.f32 %v3033_v11, %v1888_v12  ;;  %v1863_v24 = vmul.f32 %v2557_v7, %v2955_v63  ;;  %v1840_v10 = vadd.f32 1e-05, %v1824_v53  ;;  %v1809_v25 = vpop.xlane.xlu1 %1808 }
 0x43b   : > { %1974 = vst [vmem:[%s3049_s24 + $0x30] sm:$0xff] %v1958_v14  ;;  %v1908_v26 = vadd.f32 %v3033_v11, %v1885_v19  ;;  %v1868_v27 = vmul.f32 %v2559_v30, %v2963_v8  ;;  %2568 = vrsqrt.f32 %v1839_v60  ;;  %v1825_v28 = vmul.f32 0.03125, %v1809_v25  ;;  %v1935_v19 = vld [vmem:[%s3027_s28 + $0x78] sm:$0xff] }
 0x43c   : > { %1943 = vst [vmem:[%s3040_s20 + $0x38] sm:$0xff] %v1911_v21  ;;  %v1959_v29 = vadd.f32 %v1927_v15, %v1911_v21  ;;  %v1886_v32 = vmul.f32 %v3021_v1, %v1863_v24  ;;  %2570 = vrsqrt.f32 %v1840_v10 }
 0x43d   : > { %v2561_v33 = vpop.eup %2560  ;;  %1940 = vst [vmem:[%s3040_s20 + $0x20] sm:$0xff] %v1908_v26  ;;  %v1956_v63 = vadd.f32 %v1924_v23, %v1908_v26  ;;  %v1891_v13 = vmul.f32 %v3021_v1, %v1868_v27  ;;  %v1841_v35 = vadd.f32 1e-05, %v1825_v28 }
 0x43e   : > { %v2563_v8 = vpop.eup %2562  ;;  %1975 = vst [vmem:[%s3049_s24 + $0x38] sm:$0xff] %v1959_v29  ;;  %v1909_v16 = vadd.f32 %v3033_v11, %v1886_v32  ;;  %v1869_v40 = vmul.f32 %v2561_v33, %v2969_v4 }
 0x43f   : > { %1972 = vst [vmem:[%s3049_s24 + $0x20] sm:$0xff] %v1956_v63  ;;  %v1914_v34 = vadd.f32 %v3033_v11, %v1891_v13  ;;  %v1866_v41 = vmul.f32 %v2563_v8, %v2977_v22  ;;  %2572 = vrsqrt.f32 %v1841_v35  ;;  %v1928_v22 = vld [vmem:[%s3027_s28 + $0x40] sm:$0xff] }
 0x440   : > { %1941 = vst [vmem:[%s3040_s20 + $0x28] sm:$0xff] %v1909_v16  ;;  %v1957_v42 = vadd.f32 %v1925_v37, %v1909_v16  ;;  %v1892_v44 = vmul.f32 %v3021_v1, %v1869_v40 }
 0x441   : > { %v2565_v18 = vpop.eup %2564  ;;  %1946 = vst [vmem:[%s3040_s20 + $0x50] sm:$0xff] %v1914_v34  ;;  %v1962_v45 = vadd.f32 %v1930_v38, %v1914_v34  ;;  %v1889_v4 = vmul.f32 %v3021_v1, %v1866_v41 }
 0x442   : > { %v2567_v47 = vpop.eup %2566  ;;  %1973 = vst [vmem:[%s3049_s24 + $0x28] sm:$0xff] %v1957_v42  ;;  %v1915_v48 = vadd.f32 %v3033_v11, %v1892_v44  ;;  %v1867_v49 = vmul.f32 %v2565_v18, %v2983_v9 }
 0x443   : > { %1978 = vst [vmem:[%s3049_s24 + $0x50] sm:$0xff] %v1962_v45  ;;  %v1912_v51 = vadd.f32 %v3033_v11, %v1889_v4  ;;  %v1870_v52 = vmul.f32 %v2567_v47, %v2991_v31  ;;  %v1932_v31 = vld [vmem:[%s3027_s28 + $0x60] sm:$0xff] }
 0x444   : > { %1947 = vst [vmem:[%s3040_s20 + $0x58] sm:$0xff] %v1915_v48  ;;  %v1963_v43 = vadd.f32 %v1931_v46, %v1915_v48  ;;  %v1890_v20 = vmul.f32 %v3021_v1, %v1867_v49 }
 0x445   : > { %v2569_v54 = vpop.eup %2568  ;;  %1944 = vst [vmem:[%s3040_s20 + $0x40] sm:$0xff] %v1912_v51  ;;  %v1960_v55 = vadd.f32 %v1928_v22, %v1912_v51  ;;  %v1893_v56 = vmul.f32 %v3021_v1, %v1870_v52 }
 0x446   : > { %v2571_v9 = vpop.eup %2570  ;;  %1979 = vst [vmem:[%s3049_s24 + $0x58] sm:$0xff] %v1963_v43  ;;  %v1913_v57 = vadd.f32 %v3033_v11, %v1890_v20  ;;  %v1871_v58 = vmul.f32 %v2569_v54, %v2998_v36 }
 0x447   : > { %1976 = vst [vmem:[%s3049_s24 + $0x40] sm:$0xff] %v1960_v55  ;;  %v1916_v59 = vadd.f32 %v3033_v11, %v1893_v56  ;;  %v1872_v61 = vmul.f32 %v2571_v9, %v3005_v39  ;;  %v1934_v39 = vld [vmem:[%s3027_s28 + $0x70] sm:$0xff] }
 0x448   : > { %1945 = vst [vmem:[%s3040_s20 + $0x48] sm:$0xff] %v1913_v57  ;;  %v1961_v62 = vadd.f32 %v1929_v50, %v1913_v57  ;;  %v1894_v0 = vmul.f32 %v3021_v1, %v1871_v58 }
 0x449   : > { %v2573_v2 = vpop.eup %2572  ;;  %1948 = vst [vmem:[%s3040_s20 + $0x60] sm:$0xff] %v1916_v59  ;;  %v1964_v3 = vadd.f32 %v1932_v31, %v1916_v59  ;;  %v1895_v36 = vmul.f32 %v3021_v1, %v1872_v61 }
 0x44a   : > { %1977 = vst [vmem:[%s3049_s24 + $0x48] sm:$0xff] %v1961_v62  ;;  %v1917_v6 = vadd.f32 %v3033_v11, %v1894_v0  ;;  %v1873_v12 = vmul.f32 %v2573_v2, %v3011_v17 }
 0x44b   : > { %1980 = vst [vmem:[%s3049_s24 + $0x60] sm:$0xff] %v1964_v3  ;;  %v1918_v53 = vadd.f32 %v3033_v11, %v1895_v36 }
 0x44c   : > { %1949 = vst [vmem:[%s3040_s20 + $0x68] sm:$0xff] %v1917_v6  ;;  %v1965_v7 = vadd.f32 %v1933_v5, %v1917_v6  ;;  %v1896_v14 = vmul.f32 %v3021_v1, %v1873_v12 }
 0x44d   : > { %1950 = vst [vmem:[%s3040_s20 + $0x70] sm:$0xff] %v1918_v53  ;;  %v1966_v15 = vadd.f32 %v1934_v39, %v1918_v53 }
 0x44e   : > { %1981 = vst [vmem:[%s3049_s24 + $0x68] sm:$0xff] %v1965_v7  ;;  %v1919_v60 = vadd.f32 %v3033_v11, %v1896_v14 }
 0x44f   : > { %1982 = vst [vmem:[%s3049_s24 + $0x70] sm:$0xff] %v1966_v15 }
 0x450   : > { %1951 = vst [vmem:[%s3040_s20 + $0x78] sm:$0xff] %v1919_v60  ;;  %v1967_v30 = vadd.f32 %v1935_v19, %v1919_v60 }
 0x452   : > { %1983 = vst [vmem:[%s3049_s24 + $0x78] sm:$0xff] %v1967_v30 }
 0x453 PF: > { %s26_s18 = sadd.s32 1, %s2580_s18  }
 0x454   : > { %p23_p4 = scmp.ge.s32.totalorder %s26_s18, 4  }
 0x456   :  { %25 = sbr.rel (!%p23_p4) target bundleno = 1 (0x1), region = 127 }

// kernel: process_forward.5
= control target key start
LH: loop header
LB: loop body
LE: loop exit
PB: predicated region body
PF: predicated region fallthrough
CT: control target
= control target key end

     0   :  { %s1585_s21 = smov 0   ;;  %s1816_s0 = inlined_call_operand.vmem [shape: bf16[96,128], index: 0, kind: input, shape index: {}]   ;;  %s1817_s1 = inlined_call_operand.vmem [shape: bf16[96,128], index: 1, kind: input, shape index: {}]   ;;  %s1818_s2 = inlined_call_operand.vmem [shape: f32[96,128], index: 2, kind: input, shape index: {}]   ;;  %s1819_s3 = inlined_call_operand.vmem [shape: bf16[128,128], index: 3, kind: input, shape index: {}]   ;;  %s1820_s4 = inlined_call_operand.vmem [shape: bf16[128,128], index: 4, kind: input, shape index: {}]   ;;  %s1821_s5 = inlined_call_operand.vmem [shape: f32[1,128], index: 5, kind: input, shape index: {}]   ;;  %s1822_s6 = inlined_call_operand.vmem [shape: bf16[128,128], index: 6, kind: input, shape index: {}]   ;;  %s1823_s7 = inlined_call_operand.vmem [shape: f32[1,128], index: 7, kind: input, shape index: {}]   ;;  %s1824_s8 = inlined_call_operand.vmem [shape: bf16[128,128], index: 8, kind: input, shape index: {}]   ;;  %s1825_s9 = inlined_call_operand.vmem [shape: f32[1,128], index: 9, kind: input, shape index: {}]   ;;  %s1826_s10 = inlined_call_operand.vmem [shape: f32[1,128], index: 10, kind: input, shape index: {}]   ;;  %s1827_s11 = inlined_call_operand.vmem [shape: f32[1,128], index: 11, kind: input, shape index: {}]   ;;  %s1828_s12 = inlined_call_operand.vmem [shape: f32[96,128], index: 12, kind: output, shape index: {}]  }
   0x1 LB: > { %s1240_s22 = sadd.s32 4294967295, %s1516_s21   ;;  %p1244_p0 = scmp.ge.s32.totalorder %s1516_s21, 1  ;;  %s1516_s21 = sphi %s1585_s21, %s22_s21  }
   0x2   : > { %p385_p1 = scmp.lt.s32.totalorder %s1516_s21, 3 }
   0x4   : > { %p386_p2 = pnand %p1244_p0, %p385_p1 }
   0x5   : > { %v1460_v0 = vld [vmem:[%s1820_s4] sm:$0xff] (!%p386_p2)   ;;  %v1518_v1 = vmov (!%p386_p2), 0.0   ;;  %v1462_v3 = vld [vmem:[%s1820_s4 + $0x8] sm:$0xff] (!%p386_p2)   ;;  %vm1519_vm0 = vmmov (!%p386_p2), 0   ;;  %s437_s29 = smul.u32 (!%p386_p2), 6, %s1240_s22  ;;  %v1464_v5 = vld [vmem:[%s1820_s4 + $0x10] sm:$0xff] (!%p386_p2)  }
   0x6   : > { %389 = sbr.rel (%p386_p2) target bundleno = 1028 (0x404), region = 68  ;;  %1338 = vmatprep.subr.bf16.mxu0 (!%p386_p2), %v1518_v1  ;;  %1366 = vmatprep.subr.bf16.mxu1 (!%p386_p2), %v1518_v1  ;;  %v1461_v2 = vld [vmem:[%s1819_s3] sm:$0xff] (!%p386_p2)   ;;  %v1463_v4 = vld [vmem:[%s1819_s3 + $0x8] sm:$0xff] (!%p386_p2)   ;;  %v1465_v6 = vld [vmem:[%s1819_s3 + $0x10] sm:$0xff] (!%p386_p2)  }
   0x7   : > { %1339 = vmatpush3.bf16.msra.mxu0 (!%p386_p2), %v1460_v0  ;;  %1354 = vmatprep.mubr.msk.bf16.mxu0 (!%p386_p2), %vm1519_vm0, %v1518_v1  ;;  %p438_p3 = scmp.lt.s32.totalorder (!%p386_p2), %s437_s29, 11  ;;  %v1466_v7 = vld [vmem:[%s1820_s4 + $0x18] sm:$0xff] (!%p386_p2)   ;;  %v1468_v9 = vld [vmem:[%s1820_s4 + $0x20] sm:$0xff] (!%p386_p2)   ;;  %v1470_v11 = vld [vmem:[%s1820_s4 + $0x28] sm:$0xff] (!%p386_p2)  }
   0x8   : > { %1367 = vmatpush3.bf16.msra.mxu1 (!%p386_p2), %v1461_v2  ;;  %1340 = vmatprep.subr.bf16.mxu0 (!%p386_p2), %v1518_v1  ;;  %v1467_v8 = vld [vmem:[%s1819_s3 + $0x18] sm:$0xff] (!%p386_p2)   ;;  %v1469_v10 = vld [vmem:[%s1819_s3 + $0x20] sm:$0xff] (!%p386_p2)   ;;  %v1471_v12 = vld [vmem:[%s1819_s3 + $0x28] sm:$0xff] (!%p386_p2)  }
   0x9   : > { %1368 = vmatprep.subr.bf16.mxu1 (!%p386_p2), %v1518_v1  ;;  %1382 = vmatprep.mubr.msk.bf16.mxu1 (!%p386_p2), %vm1519_vm0, %v1518_v1  ;;  %v1472_v13 = vld [vmem:[%s1820_s4 + $0x30] sm:$0xff] (!%p386_p2)   ;;  %v1474_v15 = vld [vmem:[%s1820_s4 + $0x38] sm:$0xff] (!%p386_p2)   ;;  %v1482_v19 = vld [vmem:[%s1822_s6] sm:$0xff] (!%p386_p2)  }
   0xa   : > { %v1473_v14 = vld [vmem:[%s1819_s3 + $0x30] sm:$0xff] (!%p386_p2)   ;;  %v1475_v16 = vld [vmem:[%s1819_s3 + $0x38] sm:$0xff] (!%p386_p2)   ;;  %v1483_v20 = vld [vmem:[%s1822_s6 + $0x8] sm:$0xff] (!%p386_p2)  }
   0xb   : > { %1341 = vmatpush3.bf16.msra.mxu0 (!%p386_p2), %v1462_v3  ;;  %v1484_v23 = vld [vmem:[%s1822_s6 + $0x10] sm:$0xff] (!%p386_p2)   ;;  %v1485_v24 = vld [vmem:[%s1822_s6 + $0x18] sm:$0xff] (!%p386_p2)   ;;  %v1486_v27 = vld [vmem:[%s1822_s6 + $0x20] sm:$0xff] (!%p386_p2)  }
   0xc   : > { %1369 = vmatpush3.bf16.msra.mxu1 (!%p386_p2), %v1463_v4  ;;  %1342 = vmatprep.subr.bf16.mxu0 (!%p386_p2), %v1518_v1  ;;  %v1487_v28 = vld [vmem:[%s1822_s6 + $0x28] sm:$0xff] (!%p386_p2)   ;;  %v1488_v29 = vld [vmem:[%s1822_s6 + $0x30] sm:$0xff] (!%p386_p2)   ;;  %v1489_v30 = vld [vmem:[%s1822_s6 + $0x38] sm:$0xff] (!%p386_p2)  }
   0xd   : > { %1370 = vmatprep.subr.bf16.mxu1 %v1518_v1  ;;  %s1830_s29 = smov (!%p438_p3, %s437_s29), 11  ;;  %v1490_v31 = vld [vmem:[%s1824_s8] sm:$0xff]   ;;  %v1491_v32 = vld [vmem:[%s1824_s8 + $0x8] sm:$0xff]   ;;  %v1492_v33 = vld [vmem:[%s1824_s8 + $0x10] sm:$0xff]  }
   0xe   : > { %s1245_s23 = sshll.u32 %s1830_s29, 2  ;;  %v1493_v34 = vld [vmem:[%s1824_s8 + $0x18] sm:$0xff]   ;;  %v1494_v35 = vld [vmem:[%s1824_s8 + $0x20] sm:$0xff]   ;;  %v1495_v36 = vld [vmem:[%s1824_s8 + $0x28] sm:$0xff]   ;;  %s1247_s22 = sshll.u32 %s1830_s29, 3 }
   0xf   : > { %1343 = vmatpush3.bf16.msra.mxu0 %v1464_v5  ;;  %s1642_s13 = scalar_lea.vmem %s1817_s1, %s1245_s23  ;;  %s1648_s16 = scalar_lea.vmem %s1816_s0, %s1245_s23  ;;  %v1271_v39 = vld [vmem:[%s1821_s5] ss:$0 sm:$0xff] }
  0x10   : > { %1371 = vmatpush3.bf16.msra.mxu1 %v1465_v6  ;;  %1344 = vmatprep.subr.bf16.mxu0 %v1518_v1  ;;  %v1476_v17 = vld [vmem:[%s1642_s13] sm:$0xff]   ;;  %v1478_v21 = vld [vmem:[%s1642_s13 + $0x8] sm:$0xff]   ;;  %v1480_v25 = vld [vmem:[%s1642_s13 + $0x10] sm:$0xff]   ;;  %s1799_s30 = scalar_lea.vmem %s1828_s12, %s1247_s22 }
  0x11   : > { %1372 = vmatprep.subr.bf16.mxu1 %v1518_v1  ;;  %v1477_v18 = vld [vmem:[%s1648_s16] sm:$0xff]   ;;  %v1479_v22 = vld [vmem:[%s1648_s16 + $0x8] sm:$0xff]   ;;  %v1481_v26 = vld [vmem:[%s1648_s16 + $0x10] sm:$0xff]   ;;  %s1790_s16 = scalar_lea.vmem %s1818_s2, %s1247_s22 }
  0x13   : > { %1345 = vmatpush3.bf16.msra.mxu0 %v1466_v7 }
  0x14   : > { %1373 = vmatpush3.bf16.msra.mxu1 %v1467_v8  ;;  %1346 = vmatprep.subr.bf16.mxu0 %v1518_v1 }
  0x15   : > { %1374 = vmatprep.subr.bf16.mxu1 %v1518_v1 }
  0x17   : > { %1347 = vmatpush3.bf16.msra.mxu0 %v1468_v9 }
  0x18   : > { %1375 = vmatpush3.bf16.msra.mxu1 %v1469_v10  ;;  %1348 = vmatprep.subr.bf16.mxu0 %v1518_v1 }
  0x19   : > { %1376 = vmatprep.subr.bf16.mxu1 %v1518_v1 }
  0x1b   : > { %1349 = vmatpush3.bf16.msra.mxu0 %v1470_v11 }
  0x1c   : > { %1377 = vmatpush3.bf16.msra.mxu1 %v1471_v12  ;;  %1350 = vmatprep.subr.bf16.mxu0 %v1518_v1 }
  0x1d   : > { %1378 = vmatprep.subr.bf16.mxu1 %v1518_v1 }
  0x1f   : > { %1351 = vmatpush3.bf16.msra.mxu0 %v1472_v13 }
  0x20   : > { %1379 = vmatpush3.bf16.msra.mxu1 %v1473_v14  ;;  %1352 = vmatprep.subr.bf16.mxu0 %v1518_v1 }
  0x21   : > { %1380 = vmatprep.subr.bf16.mxu1 %v1518_v1 }
  0x23   : > { %1353 = vmatpush3.bf16.msra.mxu0 %v1474_v15 }
  0x24   : > { %1381 = vmatpush3.bf16.msra.mxu1 %v1475_v16  ;;  %1394 = vmatprep.subr.bf16.mxu0 %v1518_v1 }
  0x25   : > { %1422 = vmatprep.subr.bf16.mxu1 %v1518_v1 }
  0x26   : > { %1355 = vmatmul.mubr.bf16.vlgmr.msra.gmra.mrb[0].mxu0 %v1476_v17 }
  0x27   : > { %1383 = vmatmul.mubr.bf16.vlgmr.msra.gmra.mrb[0].mxu1 %v1477_v18  ;;  %1358 = vmatprep.mubr.msk.bf16.mxu0 %vm1519_vm0, %v1518_v1 }
  0x28   : > { %1386 = vmatprep.mubr.msk.bf16.mxu1 %vm1519_vm0, %v1518_v1  ;;  %1395 = vmatpush3.bf16.msra.mxu0 %v1482_v19 }
  0x29   : > { %1396 = vmatprep.subr.bf16.mxu0 %v1518_v1  ;;  %1423 = vmatpush3.bf16.msra.mxu1 %v1490_v31 }
  0x2a   : > { %1424 = vmatprep.subr.bf16.mxu1 %v1518_v1 }
  0x2c   : > { %1397 = vmatpush3.bf16.msra.mxu0 %v1483_v20  ;;  %v1496_v20 = vld [vmem:[%s1824_s8 + $0x30] sm:$0xff]  }
  0x2d   : > { %1398 = vmatprep.subr.bf16.mxu0 %v1518_v1  ;;  %1425 = vmatpush3.bf16.msra.mxu1 %v1491_v32 }
  0x2e   : > { %1359 = vmatmul.mubr.bf16.gmra.mrb[4].mxu0 %v1478_v21  ;;  %1426 = vmatprep.subr.bf16.mxu1 %v1518_v1  ;;  %v1497_v21 = vld [vmem:[%s1824_s8 + $0x38] sm:$0xff]  }
  0x2f   : > { %1387 = vmatmul.mubr.bf16.gmra.mrb[4].mxu1 %v1479_v22  ;;  %1362 = vmatprep.mubr.msk.bf16.mxu0 %vm1519_vm0, %v1518_v1  ;;  %v1272_v22 = vld [vmem:[%s1823_s7] ss:$0 sm:$0xff] }
  0x30   : > { %1390 = vmatprep.mubr.msk.bf16.mxu1 %vm1519_vm0, %v1518_v1  ;;  %1399 = vmatpush3.bf16.msra.mxu0 %v1484_v23 }
  0x31   : > { %1400 = vmatprep.subr.bf16.mxu0 %v1518_v1  ;;  %1427 = vmatpush3.bf16.msra.mxu1 %v1492_v33 }
  0x32   : > { %1428 = vmatprep.subr.bf16.mxu1 %v1518_v1 }
  0x34   : > { %1401 = vmatpush3.bf16.msra.mxu0 %v1485_v24 }
  0x35   : > { %1402 = vmatprep.subr.bf16.mxu0 %v1518_v1  ;;  %1429 = vmatpush3.bf16.msra.mxu1 %v1493_v34 }
  0x36   : > { %1363 = vmatmul.mubr.bf16.gmra.mrb[8].mxu0 %v1480_v25  ;;  %1430 = vmatprep.subr.bf16.mxu1 %v1518_v1 }
  0x37   : > { %1391 = vmatmul.mubr.bf16.gmra.mrb[8].mxu1 %v1481_v26  ;;  %1410 = vmatprep.mubr.msk.bf16.mxu0 %vm1519_vm0, %v1518_v1 }
  0x38   : > { %1403 = vmatpush3.bf16.msra.mxu0 %v1486_v27  ;;  %1438 = vmatprep.mubr.msk.bf16.mxu1 %vm1519_vm0, %v1518_v1 }
  0x39   : > { %1404 = vmatprep.subr.bf16.mxu0 %v1518_v1  ;;  %1431 = vmatpush3.bf16.msra.mxu1 %v1494_v35 }
  0x3a   : > { %1432 = vmatprep.subr.bf16.mxu1 %v1518_v1 }
  0x3c   : > { %1405 = vmatpush3.bf16.msra.mxu0 %v1487_v28 }
  0x3d   : > { %1406 = vmatprep.subr.bf16.mxu0 %v1518_v1  ;;  %1433 = vmatpush3.bf16.msra.mxu1 %v1495_v36 }
  0x3e   : > { %1434 = vmatprep.subr.bf16.mxu1 %v1518_v1 }
  0x40   : > { %1407 = vmatpush3.bf16.msra.mxu0 %v1488_v29 }
  0x41   : > { %1408 = vmatprep.subr.bf16.mxu0 %v1518_v1  ;;  %1435 = vmatpush3.bf16.msra.mxu1 %v1496_v20 }
  0x42   : > { %1436 = vmatprep.subr.bf16.mxu1 %v1518_v1 }
  0x44   : > { %1409 = vmatpush3.bf16.msra.mxu0 %v1489_v30 }
  0x45   : > { %1437 = vmatpush3.bf16.msra.mxu1 %v1497_v21 }
  0xf9   : > { %v606_v37 = vpop.f32.mrb[0].mxu0 }
  0xfa   : > { %v729_v38 = vpop.f32.mrb[0].mxu1  ;;  %v1356_v40 = vpop.f32.mrb[1].mxu0 }
  0xfb   : > { %v730_v41 = vadd.f32 %v729_v38, %v606_v37  ;;  %v1384_v42 = vpop.f32.mrb[1].mxu1  ;;  %v609_v43 = vpop.f32.mrb[2].mxu0 }
  0xfc   : > { %v732_v44 = vpop.f32.mrb[2].mxu1  ;;  %v1357_v45 = vpop.f32.mrb[3].mxu0 }
  0xfd   : > { %v759_v46 = vadd.f32 %v1271_v39, %v730_v41  ;;  %v733_v47 = vadd.f32 %v732_v44, %v609_v43  ;;  %v1385_v48 = vpop.f32.mrb[3].mxu1 }
  0xff   : > { %v760_v49 = vadd.f32 %v1271_v39, %v733_v47  ;;  %v765_v50 = vmax.f32 %v759_v46, 0.0 }
 0x101   : > { %v766_v51 = vmax.f32 %v760_v49, 0.0  ;;  %v614_v52 = vpop.f32.mrb[4].mxu0 }
 0x102   : > { %v737_v53 = vpop.f32.mrb[4].mxu1  ;;  %v1360_v54 = vpop.f32.mrb[5].mxu0 }
 0x103   : > { %v772_v55 = vpack.c.bf16 %v766_v51, %v765_v50  ;;  %v738_v56 = vadd.f32 %v737_v53, %v614_v52  ;;  %v1388_v57 = vpop.f32.mrb[5].mxu1  ;;  %v617_v58 = vpop.f32.mrb[6].mxu0  ;;  %v1281_v50 = vld [vmem:[%s1825_s9] ss:$0 sm:$0xff] }
 0x104   : > { %v740_v59 = vpop.f32.mrb[6].mxu1  ;;  %v1361_v60 = vpop.f32.mrb[7].mxu0 }
 0x105   : > { %v761_v61 = vadd.f32 %v1271_v39, %v738_v56  ;;  %v741_v62 = vadd.f32 %v740_v59, %v617_v58  ;;  %v1389_v63 = vpop.f32.mrb[7].mxu1  ;;  %1411 = vmatmul.mubr.bf16.vlgmr.msra.gmra.mrb[12].mxu0 %v772_v55 }
 0x106   : > { %1414 = vmatprep.mubr.msk.bf16.mxu0 %vm1519_vm0, %v1518_v1 }
 0x107   : > { %v762_v0 = vadd.f32 %v1271_v39, %v741_v62  ;;  %v767_v2 = vmax.f32 %v761_v61, 0.0 }
 0x109   : > { %v768_v3 = vmax.f32 %v762_v0, 0.0  ;;  %v622_v4 = vpop.f32.mrb[8].mxu0 }
 0x10a   : > { %v745_v5 = vpop.f32.mrb[8].mxu1  ;;  %v1364_v6 = vpop.f32.mrb[9].mxu0 }
 0x10b   : > { %v746_v7 = vadd.f32 %v745_v5, %v622_v4  ;;  %v1392_v8 = vpop.f32.mrb[9].mxu1  ;;  %v625_v9 = vpop.f32.mrb[10].mxu0  ;;  %v773_v10 = vpack.c.bf16 %v768_v3, %v767_v2  ;;  %v1039_v5 = vlaneseq }
 0x10c   : > { %v748_v11 = vpop.f32.mrb[10].mxu1  ;;  %v1365_v12 = vpop.f32.mrb[11].mxu0 }
 0x10d   : > { %v763_v13 = vadd.f32 %v1271_v39, %v746_v7  ;;  %v749_v14 = vadd.f32 %v748_v11, %v625_v9  ;;  %v1393_v15 = vpop.f32.mrb[11].mxu1  ;;  %1415 = vmatmul.mubr.bf16.gmra.mrb[16].mxu0 %v773_v10  ;;  %v1040_v6 = vand.u32 127, %v1039_v5 }
 0x10e   : > { %1418 = vmatprep.mubr.msk.bf16.mxu0 %vm1519_vm0, %v1518_v1 }
 0x10f   : > { %v764_v16 = vadd.f32 %v1271_v39, %v749_v14  ;;  %v769_v17 = vmax.f32 %v763_v13, 0.0  ;;  %vm1041_vm1 = vcmp.lt.s32.totalorder %v1040_v6, 32 }
 0x111   : > { %v770_v18 = vmax.f32 %v764_v16, 0.0 }
 0x113   : > { %v774_v19 = vpack.c.bf16 %v770_v18, %v769_v17 }
 0x115   : > { %1419 = vmatmul.mubr.bf16.gmra.mrb[20].mxu0 %v774_v19 }
 0x1d8   : > { %v879_v23 = vpop.f32.mrb[12].mxu0 }
 0x1d9   : > { %v880_v24 = vadd.f32 %v1272_v22, %v879_v23  ;;  %v1412_v25 = vpop.f32.mrb[13].mxu0 }
 0x1da   : > { %v882_v26 = vpop.f32.mrb[14].mxu0 }
 0x1db   : > { %v883_v27 = vadd.f32 %v1272_v22, %v882_v26  ;;  %v1413_v28 = vpop.f32.mrb[15].mxu0  ;;  %v902_v29 = vmax.f32 %v880_v24, 0.0 }
 0x1dd   : > { %v903_v30 = vmax.f32 %v883_v27, 0.0 }
 0x1df   : > { %v909_v31 = vpack.c.bf16 %v903_v30, %v902_v29 }
 0x1e0   : > { %v887_v32 = vpop.f32.mrb[16].mxu0 }
 0x1e1   : > { %v888_v33 = vadd.f32 %v1272_v22, %v887_v32  ;;  %v1416_v34 = vpop.f32.mrb[17].mxu0  ;;  %1439 = vmatmul.mubr.bf16.vlgmr.msra.gmra.mrb[12].mxu1 %v909_v31 }
 0x1e2   : > { %v890_v35 = vpop.f32.mrb[18].mxu0  ;;  %1442 = vmatprep.mubr.msk.bf16.mxu1 %vm1519_vm0, %v1518_v1 }
 0x1e3   : > { %v891_v36 = vadd.f32 %v1272_v22, %v890_v35  ;;  %v1417_v37 = vpop.f32.mrb[19].mxu0  ;;  %v904_v38 = vmax.f32 %v888_v33, 0.0 }
 0x1e5   : > { %v905_v39 = vmax.f32 %v891_v36, 0.0 }
 0x1e7   : > { %v910_v40 = vpack.c.bf16 %v905_v39, %v904_v38 }
 0x1e8   : > { %v895_v41 = vpop.f32.mrb[20].mxu0 }
 0x1e9   : > { %v896_v42 = vadd.f32 %v1272_v22, %v895_v41  ;;  %v1420_v43 = vpop.f32.mrb[21].mxu0  ;;  %1443 = vmatmul.mubr.bf16.gmra.mrb[16].mxu1 %v910_v40 }
 0x1ea   : > { %v898_v44 = vpop.f32.mrb[22].mxu0  ;;  %1446 = vmatprep.mubr.msk.bf16.mxu1 %vm1519_vm0, %v1518_v1 }
 0x1eb   : > { %v899_v45 = vadd.f32 %v1272_v22, %v898_v44  ;;  %v1421_v46 = vpop.f32.mrb[23].mxu0  ;;  %v906_v47 = vmax.f32 %v896_v42, 0.0 }
 0x1ed   : > { %v907_v48 = vmax.f32 %v899_v45, 0.0 }
 0x1ef   : > { %v911_v49 = vpack.c.bf16 %v907_v48, %v906_v47 }
 0x1f1   : > { %1447 = vmatmul.mubr.bf16.gmra.mrb[20].mxu1 %v911_v49  ;;  %v1290_v49 = vld [vmem:[%s1826_s10] ss:$0 sm:$0xff] }
 0x2b4   : > { %v1016_v51 = vpop.f32.mrb[12].mxu1 }
 0x2b5   : > { %v1017_v52 = vadd.f32 %v1281_v50, %v1016_v51  ;;  %v1440_v53 = vpop.f32.mrb[13].mxu1 }
 0x2b6   : > { %v1019_v54 = vpop.f32.mrb[14].mxu1  ;;  %v1291_v53 = vld [vmem:[%s1827_s11] ss:$0 sm:$0xff] }
 0x2b7   : > { %1042 = vadd.xlane.f32.xlu0 %v1017_v52  ;;  %v1441_v55 = vpop.f32.mrb[15].mxu1  ;;  %v1020_v56 = vadd.f32 %v1281_v50, %v1019_v54 }
 0x2bb   : > { %1044 = vadd.xlane.f32.xlu0 %v1020_v56 }
 0x2bc   : > { %v1024_v57 = vpop.f32.mrb[16].mxu1 }
 0x2bd   : > { %v1025_v1 = vadd.f32 %v1281_v50, %v1024_v57  ;;  %v1444_v58 = vpop.f32.mrb[17].mxu1 }
 0x2be   : > { %v1027_v59 = vpop.f32.mrb[18].mxu1 }
 0x2bf   : > { %1046 = vadd.xlane.f32.xlu1 %v1025_v1  ;;  %v1445_v60 = vpop.f32.mrb[19].mxu1  ;;  %v1028_v61 = vadd.f32 %v1281_v50, %v1027_v59 }
 0x2c3   : > { %1048 = vadd.xlane.f32.xlu1 %v1028_v61 }
 0x2c4   : > { %v1032_v62 = vpop.f32.mrb[20].mxu1 }
 0x2c5   : > { %v1033_v63 = vadd.f32 %v1281_v50, %v1032_v62  ;;  %v1448_v0 = vpop.f32.mrb[21].mxu1 }
 0x2c6   : > { %v1035_v2 = vpop.f32.mrb[22].mxu1 }
 0x2c7   : > { %v1036_v3 = vadd.f32 %v1281_v50, %v1035_v2  ;;  %1050 = vadd.xlane.f32.xlu0 %v1033_v63  ;;  %v1449_v4 = vpop.f32.mrb[23].mxu1 }
 0x2c9   : > { %1052 = vadd.xlane.f32.xlu1 %v1036_v3 }
 0x344   : > { %v1043_v7 = vpop.xlane.xlu0 %1042 }
 0x345   : > { %v1054_v8 = vmul.f32 0.03125, %v1043_v7 }
 0x347   : > { %v1060_v9 = vsub.f32 %v1017_v52, %v1054_v8 }
 0x348   : > { %v1045_v10 = vpop.xlane.xlu0 %1044 }
 0x349   : > { %v1055_v11 = vmul.f32 0.03125, %v1045_v10  ;;  %v1068_v12 = vsel %vm1041_vm1, %v1060_v9, 0.0  ;;  %v1144_v9 = vld [vmem:[%s1790_s16 + $0x10] sm:$0xff] }
 0x34a   : > { %v1074_v13 = vmul.f32 %v1068_v12, %v1068_v12 }
 0x34b   : > { %v1061_v14 = vsub.f32 %v1020_v56, %v1055_v11 }
 0x34c   : > { %v1047_v15 = vpop.xlane.xlu1 %1046  ;;  %1080 = vadd.xlane.f32.xlu0 %v1074_v13 }
 0x34d   : > { %v1056_v16 = vmul.f32 0.03125, %v1047_v15  ;;  %v1069_v17 = vsel %vm1041_vm1, %v1061_v14, 0.0  ;;  %v1145_v15 = vld [vmem:[%s1790_s16 + $0x18] sm:$0xff] }
 0x34e   : > { %v1075_v18 = vmul.f32 %v1069_v17, %v1069_v17 }
 0x34f   : > { %v1062_v19 = vsub.f32 %v1025_v1, %v1056_v16  ;;  %v1142_v1 = vld [vmem:[%s1790_s16] sm:$0xff] }
 0x350   : > { %v1049_v20 = vpop.xlane.xlu1 %1048  ;;  %1082 = vadd.xlane.f32.xlu1 %v1075_v18 }
 0x351   : > { %v1057_v21 = vmul.f32 0.03125, %v1049_v20  ;;  %v1070_v22 = vsel %vm1041_vm1, %v1062_v19, 0.0 }
 0x352   : > { %v1076_v23 = vmul.f32 %v1070_v22, %v1070_v22 }
 0x353   : > { %v1063_v24 = vsub.f32 %v1028_v61, %v1057_v21 }
 0x354   : > { %1084 = vadd.xlane.f32.xlu0 %v1076_v23  ;;  %v1051_v25 = vpop.xlane.xlu0 %1050 }
 0x355   : > { %v1058_v26 = vmul.f32 0.03125, %v1051_v25  ;;  %v1071_v27 = vsel %vm1041_vm1, %v1063_v24, 0.0  ;;  %v1147_v25 = vld [vmem:[%s1790_s16 + $0x28] sm:$0xff] }
 0x356   : > { %v1053_v28 = vpop.xlane.xlu1 %1052  ;;  %v1077_v29 = vmul.f32 %v1071_v27, %v1071_v27 }
 0x357   : > { %v1064_v30 = vsub.f32 %v1033_v63, %v1058_v26  ;;  %v1059_v31 = vmul.f32 0.03125, %v1053_v28 }
 0x358   : > { %1086 = vadd.xlane.f32.xlu1 %v1077_v29 }
 0x359   : > { %v1065_v32 = vsub.f32 %v1036_v3, %v1059_v31  ;;  %v1072_v33 = vsel %vm1041_vm1, %v1064_v30, 0.0  ;;  %v1143_v3 = vld [vmem:[%s1790_s16 + $0x8] sm:$0xff] }
 0x35a   : > { %v1078_v34 = vmul.f32 %v1072_v33, %v1072_v33 }
 0x35b   : > { %v1779_v35 = vsel %vm1041_vm1, %v1065_v32, 0.0 }
 0x35c   : > { %1088 = vadd.xlane.f32.xlu0 %v1078_v34  ;;  %v1079_v36 = vmul.f32 %v1779_v35, %v1779_v35 }
 0x35e   : > { %1090 = vadd.xlane.f32.xlu1 %v1079_v36 }
 0x3d9   : > { %v1081_v37 = vpop.xlane.xlu0 %1080 }
 0x3da   : > { %v1092_v38 = vmul.f32 0.03125, %v1081_v37 }
 0x3dc   : > { %v1098_v39 = vadd.f32 1e-05, %v1092_v38 }
 0x3dd   : > { %v1083_v40 = vpop.xlane.xlu1 %1082 }
 0x3de   : > { %1498 = vrsqrt.f32 %v1098_v39  ;;  %v1093_v41 = vmul.f32 0.03125, %v1083_v40 }
 0x3e0   : > { %v1099_v42 = vadd.f32 1e-05, %v1093_v41 }
 0x3e1   : > { %v1085_v43 = vpop.xlane.xlu0 %1084 }
 0x3e2   : > { %1500 = vrsqrt.f32 %v1099_v42  ;;  %v1094_v44 = vmul.f32 0.03125, %v1085_v43 }
 0x3e4   : > { %v1100_v45 = vadd.f32 1e-05, %v1094_v44 }
 0x3e5   : > { %v1087_v46 = vpop.xlane.xlu1 %1086 }
 0x3e6   : > { %1502 = vrsqrt.f32 %v1100_v45  ;;  %v1095_v47 = vmul.f32 0.03125, %v1087_v46 }
 0x3e8   : > { %v1499_v48 = vpop.eup %1498  ;;  %v1101_v50 = vadd.f32 1e-05, %v1095_v47 }
 0x3e9   : > { %v1110_v51 = vmul.f32 %v1499_v48, %v1068_v12  ;;  %v1089_v52 = vpop.xlane.xlu0 %1088 }
 0x3ea   : > { %1504 = vrsqrt.f32 %v1101_v50  ;;  %v1096_v54 = vmul.f32 0.03125, %v1089_v52 }
 0x3eb   : > { %v1123_v55 = vmul.f32 %v1290_v49, %v1110_v51  ;;  %v1091_v56 = vpop.xlane.xlu1 %1090 }
 0x3ec   : > { %v1501_v57 = vpop.eup %1500  ;;  %v1102_v58 = vadd.f32 1e-05, %v1096_v54  ;;  %v1097_v59 = vmul.f32 0.03125, %v1091_v56 }
 0x3ed   : > { %v1136_v60 = vadd.f32 %v1291_v53, %v1123_v55  ;;  %v1111_v61 = vmul.f32 %v1501_v57, %v1069_v17 }
 0x3ee   : > { %1506 = vrsqrt.f32 %v1102_v58  ;;  %v1103_v62 = vadd.f32 1e-05, %v1097_v59 }
 0x3ef   : > { %v1148_v63 = vadd.f32 %v1142_v1, %v1136_v60  ;;  %v1124_v0 = vmul.f32 %v1290_v49, %v1111_v61 }
 0x3f0   : > { %v1503_v2 = vpop.eup %1502  ;;  %1508 = vrsqrt.f32 %v1103_v62 }
 0x3f1   : > { %1154 = vst [vmem:[%s1799_s30] sm:$0xff] %v1148_v63  ;;  %v1137_v4 = vadd.f32 %v1291_v53, %v1124_v0  ;;  %v1112_v5 = vmul.f32 %v1503_v2, %v1070_v22  ;;  %v1146_v22 = vld [vmem:[%s1790_s16 + $0x20] sm:$0xff] }
 0x3f3   : > { %v1149_v6 = vadd.f32 %v1143_v3, %v1137_v4  ;;  %v1125_v7 = vmul.f32 %v1290_v49, %v1112_v5 }
 0x3f4   : > { %v1505_v8 = vpop.eup %1504 }
 0x3f5   : > { %1155 = vst [vmem:[%s1799_s30 + $0x8] sm:$0xff] %v1149_v6  ;;  %v1138_v10 = vadd.f32 %v1291_v53, %v1125_v7  ;;  %v1113_v11 = vmul.f32 %v1505_v8, %v1071_v27 }
 0x3f7   : > { %v1150_v12 = vadd.f32 %v1144_v9, %v1138_v10  ;;  %v1126_v13 = vmul.f32 %v1290_v49, %v1113_v11 }
 0x3f8   : > { %v1507_v14 = vpop.eup %1506 }
 0x3f9   : > { %1156 = vst [vmem:[%s1799_s30 + $0x10] sm:$0xff] %v1150_v12  ;;  %v1139_v16 = vadd.f32 %v1291_v53, %v1126_v13  ;;  %v1114_v17 = vmul.f32 %v1507_v14, %v1072_v33 }
 0x3fa   : > { %v1509_v18 = vpop.eup %1508 }
 0x3fb   : > { %v1151_v19 = vadd.f32 %v1145_v15, %v1139_v16  ;;  %v1127_v20 = vmul.f32 %v1290_v49, %v1114_v17  ;;  %v1115_v21 = vmul.f32 %v1509_v18, %v1779_v35 }
 0x3fd   : > { %1157 = vst [vmem:[%s1799_s30 + $0x18] sm:$0xff] %v1151_v19  ;;  %v1140_v23 = vadd.f32 %v1291_v53, %v1127_v20  ;;  %v1128_v24 = vmul.f32 %v1290_v49, %v1115_v21 }
 0x3ff   : > { %v1152_v26 = vadd.f32 %v1146_v22, %v1140_v23  ;;  %v1141_v27 = vadd.f32 %v1291_v53, %v1128_v24 }
 0x401   : > { %1158 = vst [vmem:[%s1799_s30 + $0x20] sm:$0xff] %v1152_v26  ;;  %v1153_v28 = vadd.f32 %v1147_v25, %v1141_v27 }
 0x403   : > { %1159 = vst [vmem:[%s1799_s30 + $0x28] sm:$0xff] %v1153_v28 }
 0x404 PF: > { %s22_s21 = sadd.s32 1, %s1516_s21  }
 0x405   : > { %p19_p4 = scmp.ge.s32.totalorder %s22_s21, 4  }
 0x407   :  { %21 = sbr.rel (!%p19_p4) target bundleno = 1 (0x1), region = 104 }

</bundles_post_ra>
